<compile_context>
chip_gen: v6e
topology: v6e:2x2x1
jax: 0.10.0
libtpu: 0.0.40
codegen_flags: <defaults>
</compile_context>

<pallas_src>
import functools

import jax
import jax.numpy as jnp
from jax.experimental import pallas as pl
from jax.experimental.pallas import tpu as pltpu


# -----------------------------------------------------------------------------
# Fused block kernel: one grid step = one batch element.
# -----------------------------------------------------------------------------
def _block_kernel(x_ref, w1_ref, b1_ref, wb_ref, bb_ref, w3_ref, b3_ref,
                  wres_ref, o_ref, *, H, W, Ho, Wo, stride, expand, identity):
    f32, bf16 = jnp.float32, jnp.bfloat16
    Mo = Ho * Wo
    Ch = wb_ref.shape[1]                       # hidden channels

    x16 = x_ref[0]                             # (m_in, cin) bf16

    # ---- 1x1 expand conv + BN1 + ReLU6 (pointwise) ---------------------------
    if expand:
        h32 = jnp.clip(jnp.dot(x16, w1_ref[...], preferred_element_type=f32)
                       + b1_ref[...], 0.0, 6.0)
        h16 = h32.astype(bf16)                 # single activation cast
    else:
        h16 = x16                              # hidden == inp
        h32 = x16.astype(f32)

    def dotf(a, w):
        return jnp.dot(a, w, preferred_element_type=f32)

    idx = jax.lax.broadcasted_iota(jnp.int32, (Mo, Ch), 0)   # flat pixel index

    # ---- shifted taps: XLU rolls + edge masks (no padded copies) -------------
    if stride == 1:
        col = idx % W
        ctr16 = h16
        left16 = jnp.where(col != 0, pltpu.roll(h32, 1, 0), 0.0).astype(bf16)
        right16 = jnp.where(col != W - 1,
                            pltpu.roll(h32, Mo - 1, 0), 0.0).astype(bf16)
        up16 = jnp.where(idx >= W, pltpu.roll(h32, W, 0), 0.0).astype(bf16)
        down16 = jnp.where(idx < (H - 1) * W,
                           pltpu.roll(h32, Mo - W, 0), 0.0).astype(bf16)
    else:
        # parity planes built by the wrapper:
        #   plane 0: (even row, even col) -> centre taps
        #   plane 1: (even row, odd  col) -> right / (shifted) left taps
        #   plane 2: (odd  row, even col) -> down  / (shifted) up   taps
        col = idx % Wo
        ctr16 = h16[:Mo]
        right16 = h16[Mo:2 * Mo]
        down16 = h16[2 * Mo:]
        left16 = jnp.where(col != 0,
                           pltpu.roll(h32[Mo:2 * Mo], 1, 0), 0.0).astype(bf16)
        up16 = jnp.where(idx >= Wo,
                         pltpu.roll(h32[2 * Mo:], Wo, 0), 0.0).astype(bf16)

    # ---- six branch convs as ONE 5-tap block-diagonal matmul group -----------
    acc = dotf(ctr16, wb_ref[4])
    acc += dotf(left16, wb_ref[0])
    acc += dotf(right16, wb_ref[1])
    acc += dotf(up16, wb_ref[2])
    acc += dotf(down16, wb_ref[3])
    y16 = jnp.clip(acc + bb_ref[...], 0.0, 6.0).astype(bf16)   # (Mo, hidden)

    # ---- 1x1 projection + BN3 (+ residual folded in as identity matmul) ------
    out = dotf(y16, w3_ref[...]) + b3_ref[...]                 # (Mo, Np) f32
    if identity:
        out = out + dotf(x16, wres_ref[...])
    o_ref[0] = out.astype(o_ref.dtype)                         # lane-dense bf16


# -----------------------------------------------------------------------------
# Public forward (NCHW in / NCHW out, like the PyTorch module)
# -----------------------------------------------------------------------------
def inverted_residual_onesixth(x_nchw, p):
    B, cin, H, W = x_nchw.shape
    assert cin == p["inp"]
    stride, oup, Np = p["stride"], p["oup"], p["npad"]
    if stride == 1:
        Ho, Wo = H, W
    else:
        # TODO(synk): odd H/W at stride 2 would need a masked tail in the
        # space-to-depth relayout; the module's typical inputs are even.
        assert H % 2 == 0 and W % 2 == 0
        Ho, Wo = H // 2, W // 2
    Mo = Ho * Wo

    x = jnp.transpose(x_nchw, (0, 2, 3, 1)).astype(jnp.bfloat16)   # NHWC bf16
    if stride == 1:
        x_in = x.reshape(B, H * W, cin)
    else:
        x4 = x.reshape(B, Ho, 2, Wo, 2, cin)
        planes = jnp.stack([x4[:, :, 0, :, 0, :],      # even row, even col
                            x4[:, :, 0, :, 1, :],      # even row, odd  col
                            x4[:, :, 1, :, 0, :]],     # odd  row, even col
                           axis=1)                     # (B, 3, Ho, Wo, cin)
        x_in = planes.reshape(B, 3 * Mo, cin)
    m_in = x_in.shape[1]

    ops = p["ops"]
    kernel = functools.partial(
        _block_kernel, H=H, W=W, Ho=Ho, Wo=Wo, stride=stride,
        expand=p["expand"], identity=p["identity"])

    def _full(shape):                       # whole-array block, fetched once
        nd = len(shape)
        return pl.BlockSpec(shape, lambda b, _n=nd: (0,) * _n)

    grid_spec = pltpu.PrefetchScalarGridSpec(
        num_scalar_prefetch=0,
        grid=(B,),
        in_specs=[
            pl.BlockSpec((1, m_in, cin), lambda b: (b, 0, 0)),
            _full(ops["w1"].shape), _full(ops["b1"].shape),
            _full(ops["wb"].shape), _full(ops["bb"].shape),
            _full(ops["w3"].shape), _full(ops["b3"].shape),
            _full(ops["wres"].shape),
        ],
        out_specs=pl.BlockSpec((1, Mo, Np), lambda b: (b, 0, 0)),
    )
    out = pl.pallas_call(
        kernel,
        out_shape=jax.ShapeDtypeStruct((B, Mo, Np), jnp.bfloat16),
        grid_spec=grid_spec,
        compiler_params=pltpu.CompilerParams(
            dimension_semantics=("parallel",)),
    )(x_in, ops["w1"], ops["b1"], ops["wb"], ops["bb"], ops["w3"], ops["b3"],
      ops["wres"])
    y = out[:, :, :oup].reshape(B, Ho, Wo, oup)
    return jnp.transpose(y, (0, 3, 1, 2)).astype(jnp.float32)


# -----------------------------------------------------------------------------
# Parameter construction (deterministic, synthetic) + BN folding + fused ops
# -----------------------------------------------------------------------------
def _kaiming(key, cout, cin, kh, kw):
    fan_out = cout * kh * kw
    return jax.random.normal(key, (cout, cin, kh, kw), jnp.float32) * (2.0 / fan_out) ** 0.5


def _bn_fold(key, c, eps=1e-5):
    k1, k2, k3, k4 = jax.random.split(key, 4)
    gamma = 1.0 + 0.2 * jax.random.normal(k1, (c,), jnp.float32)
    beta = 0.2 * jax.random.normal(k2, (c,), jnp.float32)
    mean = 0.2 * jax.random.normal(k3, (c,), jnp.float32)
    var = jax.random.uniform(k4, (c,), jnp.float32, minval=0.5, maxval=1.5)
    scale = gamma / jnp.sqrt(var + eps)
    return scale, beta - mean * scale


def _fold(w, scale):                        # fold BN scale, round to bf16
    return (w * scale[:, None, None, None]).astype(jnp.bfloat16)


def make_block_params(key, inp, oup, stride, expand_ratio, hidden_dim=None):
    if hidden_dim is None:
        hidden_dim = int(round(inp * expand_ratio))
    assert hidden_dim % 6 == 0, "hidden_dim must be divisible by 6 (torch chunk(6))"
    ck = hidden_dim // 6
    gh = 3 * ck
    expand = expand_ratio != 1
    identity = (stride == 1 and inp == oup)
    keys = jax.random.split(key, 20)
    nk = iter(list(keys)).__next__

    bf16, f32 = jnp.bfloat16, jnp.float32
    layers = {}
    if expand:
        w1 = _kaiming(nk(), hidden_dim, inp, 1, 1)
        s1, b1 = _bn_fold(nk(), hidden_dim)
        layers["w1"], layers["b1"] = _fold(w1, s1), b1
    branches = []
    for i in range(6):
        kh, kw = ((1, 3) if i % 2 == 0 else (3, 1))
        w = _kaiming(nk(), ck, ck, kh, kw)
        s, b = _bn_fold(nk(), ck)
        branches.append((_fold(w, s), b))
    layers["branches"] = branches
    w3 = _kaiming(nk(), oup, hidden_dim, 1, 1)
    s3, b3 = _bn_fold(nk(), oup)
    layers["w3"], layers["b3"] = _fold(w3, s3), b3

    # ---- merged Pallas operands ------------------------------------------------
    # Tap order: 0=left(kw=0) 1=right(kw=2) 2=up(kh=0) 3=down(kh=2) 4=centre.
    # Accumulator columns: [0:gh] = (1,3) branches 0,2,4; [gh:hidden] = 1,3,5.
    wb = jnp.zeros((5, hidden_dim, hidden_dim), bf16)
    bb = jnp.zeros((hidden_dim,), f32)
    for slot, br in enumerate((0, 2, 4)):                 # (1,3) horizontal
        w, b = branches[br]                               # (ck, ck, 1, 3) OIHW
        blk = jnp.transpose(w[:, :, 0, :], (2, 1, 0))     # (tap, cin, cout)
        rs, cs = br * ck, slot * ck
        wb = wb.at[0, rs:rs + ck, cs:cs + ck].set(blk[0])
        wb = wb.at[4, rs:rs + ck, cs:cs + ck].set(blk[1])
        wb = wb.at[1, rs:rs + ck, cs:cs + ck].set(blk[2])
        bb = bb.at[cs:cs + ck].set(b)
    for slot, br in enumerate((1, 3, 5)):                 # (3,1) vertical
        w, b = branches[br]                               # (ck, ck, 3, 1)
        blk = jnp.transpose(w[:, :, :, 0], (2, 1, 0))
        rs, cs = br * ck, gh + slot * ck
        wb = wb.at[2, rs:rs + ck, cs:cs + ck].set(blk[0])
        wb = wb.at[4, rs:rs + ck, cs:cs + ck].set(blk[1])
        wb = wb.at[3, rs:rs + ck, cs:cs + ck].set(blk[2])
        bb = bb.at[cs:cs + ck].set(b)

    npad = max(128, ((oup + 127) // 128) * 128)           # lane-dense output
    w3m = jnp.transpose(layers["w3"][:, :, 0, 0], (1, 0)) # (hidden, oup)
    perm = jnp.concatenate([jnp.arange(br * ck, (br + 1) * ck)
                            for br in (0, 2, 4, 1, 3, 5)])
    w3p = jnp.zeros((hidden_dim, npad), bf16).at[:, :oup].set(w3m[perm])
    b3p = jnp.zeros((1, npad), f32).at[0, :oup].set(layers["b3"])
    wres = jnp.zeros((inp, npad), bf16)
    if identity:
        wres = wres.at[:inp, :inp].set(jnp.eye(inp, dtype=bf16))

    ops = dict(wb=wb, bb=bb.reshape(1, hidden_dim), w3=w3p, b3=b3p, wres=wres)
    if expand:
        ops["w1"] = jnp.transpose(layers["w1"][:, :, 0, 0], (1, 0))  # (inp, hidden)
        ops["b1"] = layers["b1"].reshape(1, hidden_dim)
    else:
        ops["w1"] = jnp.zeros((1, 1), bf16)               # unused dummies
        ops["b1"] = jnp.zeros((1, 1), f32)

    return dict(inp=inp, oup=oup, stride=stride, hidden=hidden_dim, ck=ck,
                npad=npad, expand=expand, identity=identity,
                layers=layers, ops=ops)


# -----------------------------------------------------------------------------
# Plain-JAX reference (same folded bf16 weights, emulates the kernel's bf16
# activation rounding points) used to validate the Pallas lowering.
# -----------------------------------------------------------------------------
def reference_forward(x_nchw, p):
    f32, bf16 = jnp.float32, jnp.bfloat16
    rnd = lambda a: a.astype(bf16).astype(f32)
    s, ck = p["stride"], p["ck"]

    def conv(a, w_oihw, stride, pad):
        w = jnp.transpose(w_oihw.astype(f32), (2, 3, 1, 0))      # OIHW -> HWIO
        return jax.lax.conv_general_dilated(
            a, w, window_strides=(stride, stride), padding=pad,
            dimension_numbers=("NHWC", "HWIO", "NHWC"),
            precision=jax.lax.Precision.HIGHEST)

    x = rnd(jnp.transpose(x_nchw, (0, 2, 3, 1)))
    L = p["layers"]
    if p["expand"]:
        h = conv(x, L["w1"], 1, ((0, 0), (0, 0))) + L["b1"]
        h = rnd(jnp.clip(h, 0.0, 6.0))
    else:
        h = x
    outs = []
    for i in range(6):
        w, b = L["branches"][i]
        xi = h[..., i * ck:(i + 1) * ck]
        pad = ((0, 0), (1, 1)) if i % 2 == 0 else ((1, 1), (0, 0))
        yi = conv(xi, w, s, pad) + b
        outs.append(rnd(jnp.clip(yi, 0.0, 6.0)))
    hb = jnp.concatenate(outs, axis=-1)
    y = conv(hb, L["w3"], 1, ((0, 0), (0, 0))) + L["b3"]
    if p["identity"]:
        y = y + x
    return jnp.transpose(y, (0, 3, 1, 2))


# -----------------------------------------------------------------------------
if __name__ == "__main__":
    root = jax.random.PRNGKey(0)
    kx, k1, k2, k3 = jax.random.split(root, 4)

    B, H, W = 2, 16, 16
    x = jax.random.normal(kx, (B, 24, H, W), jnp.float32)

    configs = [
        (make_block_params(k1, inp=24, oup=24, stride=1, expand_ratio=6,
                           hidden_dim=48), "stride1_identity"),
        (make_block_params(k2, inp=24, oup=32, stride=2, expand_ratio=6,
                           hidden_dim=48), "stride2"),
        (make_block_params(k3, inp=24, oup=24, stride=1, expand_ratio=1),
         "expand1_identity"),
    ]

    for p, name in configs:
        fwd = jax.jit(functools.partial(inverted_residual_onesixth, p=p))
        out = jax.block_until_ready(fwd(x))
        ho = H if p["stride"] == 1 else H // 2
        assert out.shape == (B, p["oup"], ho, ho), (name, out.shape)
        assert bool(jnp.isfinite(out).all()), name
        ref = jax.jit(functools.partial(reference_forward, p=p))(x)
        err = float(jnp.max(jnp.abs(out - ref)))
        # The kernel stores bf16 (lane-dense writeback); allow ~1 bf16 ulp at
        # the output magnitude on top of the f32-accumulation tolerance.
        tol = 2e-2 + 4e-3 * float(jnp.max(jnp.abs(ref)))
        assert err < tol, (name, err, tol)

    print("KERNEL_OK")
</pallas_src>

<mosaic_0001>
module attributes {stable_mosaic.version = 11 : i64} {
  func.func @_block_kernel(%arg0: i32, %arg1: memref<1x256x24xbf16, #tpu.memory_space<vmem>>, %arg2: memref<24x48xbf16, #tpu.memory_space<vmem>>, %arg3: memref<1x48xf32, #tpu.memory_space<vmem>>, %arg4: memref<5x48x48xbf16, #tpu.memory_space<vmem>>, %arg5: memref<1x48xf32, #tpu.memory_space<vmem>>, %arg6: memref<48x128xbf16, #tpu.memory_space<vmem>>, %arg7: memref<1x128xf32, #tpu.memory_space<vmem>>, %arg8: memref<24x128xbf16, #tpu.memory_space<vmem>>, %arg9: memref<1x256x128xbf16, #tpu.memory_space<vmem>>) attributes {dimension_semantics = [#tpu.dimension_semantics<parallel>], iteration_bounds = array<i64: 2>, scalar_prefetch = 0 : i64, scratch_operands = 0 : i64, tpu.core_type = #tpu.core_type<tc>, window_params = [{transform_indices = @transform_0, window_bounds = array<i64: 1, 256, 24>}, {pipeline_mode = #tpu.pipeline_mode<synchronous>, transform_indices = @transform_1, window_bounds = array<i64: 24, 48>}, {pipeline_mode = #tpu.pipeline_mode<synchronous>, transform_indices = @transform_2, window_bounds = array<i64: 1, 48>}, {pipeline_mode = #tpu.pipeline_mode<synchronous>, transform_indices = @transform_3, window_bounds = array<i64: 5, 48, 48>}, {pipeline_mode = #tpu.pipeline_mode<synchronous>, transform_indices = @transform_4, window_bounds = array<i64: 1, 48>}, {pipeline_mode = #tpu.pipeline_mode<synchronous>, transform_indices = @transform_5, window_bounds = array<i64: 48, 128>}, {pipeline_mode = #tpu.pipeline_mode<synchronous>, transform_indices = @transform_6, window_bounds = array<i64: 1, 128>}, {pipeline_mode = #tpu.pipeline_mode<synchronous>, transform_indices = @transform_7, window_bounds = array<i64: 24, 128>}, {transform_indices = @transform_8, window_bounds = array<i64: 1, 256, 128>}]} {
    %c0 = arith.constant 0 : index
    %c0_0 = arith.constant 0 : index
    %c0_1 = arith.constant 0 : index
    %0 = vector.load %arg1[%c0, %c0_0, %c0_1] : memref<1x256x24xbf16, #tpu.memory_space<vmem>>, vector<1x256x24xbf16>
    %1 = vector.shape_cast %0 : vector<1x256x24xbf16> to vector<256x24xbf16>
    %c0_2 = arith.constant 0 : index
    %c0_3 = arith.constant 0 : index
    %2 = vector.load %arg2[%c0_2, %c0_3] : memref<24x48xbf16, #tpu.memory_space<vmem>>, vector<24x48xbf16>
    %cst = arith.constant dense<0.000000e+00> : vector<256x48xf32>
    %3 = tpu.matmul %1, %2, %cst {dimension_numbers = #tpu.dot_dimension_numbers<[1], [0], [0], [1], [0, 0, 1, 1], [], []>} : vector<256x24xbf16>, vector<24x48xbf16>, vector<256x48xf32> -> vector<256x48xf32>
    %c0_4 = arith.constant 0 : index
    %c0_5 = arith.constant 0 : index
    %4 = vector.load %arg3[%c0_4, %c0_5] : memref<1x48xf32, #tpu.memory_space<vmem>>, vector<1x48xf32>
    %5 = vector.broadcast %4 : vector<1x48xf32> to vector<256x48xf32>
    %6 = arith.addf %3, %5 : vector<256x48xf32>
    %cst_6 = arith.constant 0.000000e+00 : f32
    %cst_7 = arith.constant 6.000000e+00 : f32
    %7 = vector.broadcast %cst_6 : f32 to vector<256x48xf32>
    %8 = arith.maximumf %7, %6 : vector<256x48xf32>
    %9 = vector.broadcast %cst_7 : f32 to vector<256x48xf32>
    %10 = arith.minimumf %9, %8 : vector<256x48xf32>
    %11 = arith.truncf %10 : vector<256x48xf32> to vector<256x48xbf16>
    %12 = tpu.iota {dimensions = array<i32: 0>} : vector<256x48xi32>
    %c16_i32 = arith.constant 16 : i32
    %c0_i32 = arith.constant 0 : i32
    %13 = arith.cmpi eq, %c16_i32, %c0_i32 : i32
    %c1_i32 = arith.constant 1 : i32
    %14 = arith.select %13, %c1_i32, %c16_i32 : i32
    %15 = vector.broadcast %14 : i32 to vector<256x48xi32>
    %16 = arith.remsi %12, %15 : vector<256x48xi32>
    %c0_i32_8 = arith.constant 0 : i32
    %17 = vector.broadcast %c0_i32_8 : i32 to vector<256x48xi32>
    %18 = arith.cmpi ne, %16, %17 : vector<256x48xi32>
    %c0_i32_9 = arith.constant 0 : i32
    %19 = vector.broadcast %c0_i32_9 : i32 to vector<256x48xi32>
    %20 = arith.cmpi slt, %16, %19 : vector<256x48xi32>
    %c0_i32_10 = arith.constant 0 : i32
    %21 = arith.cmpi slt, %14, %c0_i32_10 : i32
    %22 = vector.broadcast %21 : i1 to vector<256x48xi1>
    %23 = vector.broadcast %22 : vector<256x48xi1> to vector<256x48xi1>
    %24 = arith.xori %20, %23 : vector<256x48xi1>
    %25 = arith.andi %24, %18 : vector<256x48xi1>
    %26 = vector.broadcast %14 : i32 to vector<256x48xi32>
    %27 = arith.addi %16, %26 : vector<256x48xi32>
    %28 = arith.select %25, %27, %16 : vector<256x48xi1>, vector<256x48xi32>
    %c0_i32_11 = arith.constant 0 : i32
    %29 = vector.broadcast %c0_i32_11 : i32 to vector<256x48xi32>
    %30 = arith.cmpi ne, %28, %29 : vector<256x48xi32>
    %c1_i32_12 = arith.constant 1 : i32
    %31 = tpu.dynamic_rotate %10 by %c1_i32_12 dim 0 : vector<256x48xf32>, i32 -> vector<256x48xf32>
    %cst_13 = arith.constant 0.000000e+00 : f32
    %32 = vector.broadcast %cst_13 : f32 to vector<256x48xf32>
    %33 = arith.select %30, %31, %32 : vector<256x48xi1>, vector<256x48xf32>
    %34 = arith.truncf %33 : vector<256x48xf32> to vector<256x48xbf16>
    %c15_i32 = arith.constant 15 : i32
    %35 = vector.broadcast %c15_i32 : i32 to vector<256x48xi32>
    %36 = arith.cmpi ne, %28, %35 : vector<256x48xi32>
    %c255_i32 = arith.constant 255 : i32
    %37 = tpu.dynamic_rotate %10 by %c255_i32 dim 0 : vector<256x48xf32>, i32 -> vector<256x48xf32>
    %cst_14 = arith.constant 0.000000e+00 : f32
    %38 = vector.broadcast %cst_14 : f32 to vector<256x48xf32>
    %39 = arith.select %36, %37, %38 : vector<256x48xi1>, vector<256x48xf32>
    %40 = arith.truncf %39 : vector<256x48xf32> to vector<256x48xbf16>
    %c16_i32_15 = arith.constant 16 : i32
    %41 = vector.broadcast %c16_i32_15 : i32 to vector<256x48xi32>
    %42 = arith.cmpi sge, %12, %41 : vector<256x48xi32>
    %c16_i32_16 = arith.constant 16 : i32
    %43 = tpu.dynamic_rotate %10 by %c16_i32_16 dim 0 : vector<256x48xf32>, i32 -> vector<256x48xf32>
    %cst_17 = arith.constant 0.000000e+00 : f32
    %44 = vector.broadcast %cst_17 : f32 to vector<256x48xf32>
    %45 = arith.select %42, %43, %44 : vector<256x48xi1>, vector<256x48xf32>
    %46 = arith.truncf %45 : vector<256x48xf32> to vector<256x48xbf16>
    %c240_i32 = arith.constant 240 : i32
    %47 = vector.broadcast %c240_i32 : i32 to vector<256x48xi32>
    %48 = arith.cmpi slt, %12, %47 : vector<256x48xi32>
    %c240_i32_18 = arith.constant 240 : i32
    %49 = tpu.dynamic_rotate %10 by %c240_i32_18 dim 0 : vector<256x48xf32>, i32 -> vector<256x48xf32>
    %cst_19 = arith.constant 0.000000e+00 : f32
    %50 = vector.broadcast %cst_19 : f32 to vector<256x48xf32>
    %51 = arith.select %48, %49, %50 : vector<256x48xi1>, vector<256x48xf32>
    %52 = arith.truncf %51 : vector<256x48xf32> to vector<256x48xbf16>
    %c4 = arith.constant 4 : index
    %c0_20 = arith.constant 0 : index
    %c0_21 = arith.constant 0 : index
    %53 = vector.load %arg4[%c4, %c0_20, %c0_21] : memref<5x48x48xbf16, #tpu.memory_space<vmem>>, vector<1x48x48xbf16>
    %54 = vector.shape_cast %53 : vector<1x48x48xbf16> to vector<48x48xbf16>
    %cst_22 = arith.constant dense<0.000000e+00> : vector<256x48xf32>
    %55 = tpu.matmul %11, %54, %cst_22 {dimension_numbers = #tpu.dot_dimension_numbers<[1], [0], [0], [1], [0, 0, 1, 1], [], []>} : vector<256x48xbf16>, vector<48x48xbf16>, vector<256x48xf32> -> vector<256x48xf32>
    %c0_23 = arith.constant 0 : index
    %c0_24 = arith.constant 0 : index
    %c0_25 = arith.constant 0 : index
    %56 = vector.load %arg4[%c0_23, %c0_24, %c0_25] : memref<5x48x48xbf16, #tpu.memory_space<vmem>>, vector<1x48x48xbf16>
    %57 = vector.shape_cast %56 : vector<1x48x48xbf16> to vector<48x48xbf16>
    %cst_26 = arith.constant dense<0.000000e+00> : vector<256x48xf32>
    %58 = tpu.matmul %34, %57, %cst_26 {dimension_numbers = #tpu.dot_dimension_numbers<[1], [0], [0], [1], [0, 0, 1, 1], [], []>} : vector<256x48xbf16>, vector<48x48xbf16>, vector<256x48xf32> -> vector<256x48xf32>
    %59 = arith.addf %55, %58 : vector<256x48xf32>
    %c1 = arith.constant 1 : index
    %c0_27 = arith.constant 0 : index
    %c0_28 = arith.constant 0 : index
    %60 = vector.load %arg4[%c1, %c0_27, %c0_28] : memref<5x48x48xbf16, #tpu.memory_space<vmem>>, vector<1x48x48xbf16>
    %61 = vector.shape_cast %60 : vector<1x48x48xbf16> to vector<48x48xbf16>
    %cst_29 = arith.constant dense<0.000000e+00> : vector<256x48xf32>
    %62 = tpu.matmul %40, %61, %cst_29 {dimension_numbers = #tpu.dot_dimension_numbers<[1], [0], [0], [1], [0, 0, 1, 1], [], []>} : vector<256x48xbf16>, vector<48x48xbf16>, vector<256x48xf32> -> vector<256x48xf32>
    %63 = arith.addf %59, %62 : vector<256x48xf32>
    %c2 = arith.constant 2 : index
    %c0_30 = arith.constant 0 : index
    %c0_31 = arith.constant 0 : index
    %64 = vector.load %arg4[%c2, %c0_30, %c0_31] : memref<5x48x48xbf16, #tpu.memory_space<vmem>>, vector<1x48x48xbf16>
    %65 = vector.shape_cast %64 : vector<1x48x48xbf16> to vector<48x48xbf16>
    %cst_32 = arith.constant dense<0.000000e+00> : vector<256x48xf32>
    %66 = tpu.matmul %46, %65, %cst_32 {dimension_numbers = #tpu.dot_dimension_numbers<[1], [0], [0], [1], [0, 0, 1, 1], [], []>} : vector<256x48xbf16>, vector<48x48xbf16>, vector<256x48xf32> -> vector<256x48xf32>
    %67 = arith.addf %63, %66 : vector<256x48xf32>
    %c3 = arith.constant 3 : index
    %c0_33 = arith.constant 0 : index
    %c0_34 = arith.constant 0 : index
    %68 = vector.load %arg4[%c3, %c0_33, %c0_34] : memref<5x48x48xbf16, #tpu.memory_space<vmem>>, vector<1x48x48xbf16>
    %69 = vector.shape_cast %68 : vector<1x48x48xbf16> to vector<48x48xbf16>
    %cst_35 = arith.constant dense<0.000000e+00> : vector<256x48xf32>
    %70 = tpu.matmul %52, %69, %cst_35 {dimension_numbers = #tpu.dot_dimension_numbers<[1], [0], [0], [1], [0, 0, 1, 1], [], []>} : vector<256x48xbf16>, vector<48x48xbf16>, vector<256x48xf32> -> vector<256x48xf32>
    %71 = arith.addf %67, %70 : vector<256x48xf32>
    %c0_36 = arith.constant 0 : index
    %c0_37 = arith.constant 0 : index
    %72 = vector.load %arg5[%c0_36, %c0_37] : memref<1x48xf32, #tpu.memory_space<vmem>>, vector<1x48xf32>
    %73 = vector.broadcast %72 : vector<1x48xf32> to vector<256x48xf32>
    %74 = arith.addf %71, %73 : vector<256x48xf32>
    %cst_38 = arith.constant 0.000000e+00 : f32
    %cst_39 = arith.constant 6.000000e+00 : f32
    %75 = vector.broadcast %cst_38 : f32 to vector<256x48xf32>
    %76 = arith.maximumf %75, %74 : vector<256x48xf32>
    %77 = vector.broadcast %cst_39 : f32 to vector<256x48xf32>
    %78 = arith.minimumf %77, %76 : vector<256x48xf32>
    %79 = arith.truncf %78 : vector<256x48xf32> to vector<256x48xbf16>
    %c0_40 = arith.constant 0 : index
    %c0_41 = arith.constant 0 : index
    %80 = vector.load %arg6[%c0_40, %c0_41] : memref<48x128xbf16, #tpu.memory_space<vmem>>, vector<48x128xbf16>
    %cst_42 = arith.constant dense<0.000000e+00> : vector<256x128xf32>
    %81 = tpu.matmul %79, %80, %cst_42 {dimension_numbers = #tpu.dot_dimension_numbers<[1], [0], [0], [1], [0, 0, 1, 1], [], []>} : vector<256x48xbf16>, vector<48x128xbf16>, vector<256x128xf32> -> vector<256x128xf32>
    %c0_43 = arith.constant 0 : index
    %c0_44 = arith.constant 0 : index
    %82 = vector.load %arg7[%c0_43, %c0_44] : memref<1x128xf32, #tpu.memory_space<vmem>>, vector<1x128xf32>
    %83 = vector.broadcast %82 : vector<1x128xf32> to vector<256x128xf32>
    %84 = arith.addf %81, %83 : vector<256x128xf32>
    %c0_45 = arith.constant 0 : index
    %c0_46 = arith.constant 0 : index
    %85 = vector.load %arg8[%c0_45, %c0_46] : memref<24x128xbf16, #tpu.memory_space<vmem>>, vector<24x128xbf16>
    %cst_47 = arith.constant dense<0.000000e+00> : vector<256x128xf32>
    %86 = tpu.matmul %1, %85, %cst_47 {dimension_numbers = #tpu.dot_dimension_numbers<[1], [0], [0], [1], [0, 0, 1, 1], [], []>} : vector<256x24xbf16>, vector<24x128xbf16>, vector<256x128xf32> -> vector<256x128xf32>
    %87 = arith.addf %84, %86 : vector<256x128xf32>
    %88 = arith.truncf %87 : vector<256x128xf32> to vector<256x128xbf16>
    %c0_48 = arith.constant 0 : index
    %c0_49 = arith.constant 0 : index
    %c0_50 = arith.constant 0 : index
    %89 = vector.load %arg9[%c0_48, %c0_49, %c0_50] : memref<1x256x128xbf16, #tpu.memory_space<vmem>>, vector<1x256x128xbf16>
    %90 = vector.shape_cast %89 : vector<1x256x128xbf16> to vector<256x128xbf16>
    %91 = vector.shape_cast %88 : vector<256x128xbf16> to vector<1x256x128xbf16>
    tpu.vector_store %arg9[%c0_48, %c0_49, %c0_50], %91 {strides = array<i32>} : memref<1x256x128xbf16, #tpu.memory_space<vmem>>, vector<1x256x128xbf16>,
    return
  }
  func.func @transform_0(%arg0: i32) -> (i32, i32, i32) {
    %c0_i32 = arith.constant 0 : i32
    %c0_i32_0 = arith.constant 0 : i32
    %c0_i32_1 = arith.constant 0 : i32
    return %arg0, %c0_i32, %c0_i32_0 : i32, i32, i32
  }
  func.func @transform_1(%arg0: i32) -> (i32, i32) {
    %c0_i32 = arith.constant 0 : i32
    %c0_i32_0 = arith.constant 0 : i32
    %c0_i32_1 = arith.constant 0 : i32
    return %c0_i32, %c0_i32_0 : i32, i32
  }
  func.func @transform_2(%arg0: i32) -> (i32, i32) {
    %c0_i32 = arith.constant 0 : i32
    %c0_i32_0 = arith.constant 0 : i32
    %c0_i32_1 = arith.constant 0 : i32
    return %c0_i32, %c0_i32_0 : i32, i32
  }
  func.func @transform_3(%arg0: i32) -> (i32, i32, i32) {
    %c0_i32 = arith.constant 0 : i32
    %c0_i32_0 = arith.constant 0 : i32
    %c0_i32_1 = arith.constant 0 : i32
    %c0_i32_2 = arith.constant 0 : i32
    return %c0_i32, %c0_i32_0, %c0_i32_1 : i32, i32, i32
  }
  func.func @transform_4(%arg0: i32) -> (i32, i32) {
    %c0_i32 = arith.constant 0 : i32
    %c0_i32_0 = arith.constant 0 : i32
    %c0_i32_1 = arith.constant 0 : i32
    return %c0_i32, %c0_i32_0 : i32, i32
  }
  func.func @transform_5(%arg0: i32) -> (i32, i32) {
    %c0_i32 = arith.constant 0 : i32
    %c0_i32_0 = arith.constant 0 : i32
    %c0_i32_1 = arith.constant 0 : i32
    return %c0_i32, %c0_i32_0 : i32, i32
  }
  func.func @transform_6(%arg0: i32) -> (i32, i32) {
    %c0_i32 = arith.constant 0 : i32
    %c0_i32_0 = arith.constant 0 : i32
    %c0_i32_1 = arith.constant 0 : i32
    return %c0_i32, %c0_i32_0 : i32, i32
  }
  func.func @transform_7(%arg0: i32) -> (i32, i32) {
    %c0_i32 = arith.constant 0 : i32
    %c0_i32_0 = arith.constant 0 : i32
    %c0_i32_1 = arith.constant 0 : i32
    return %c0_i32, %c0_i32_0 : i32, i32
  }
  func.func @transform_8(%arg0: i32) -> (i32, i32, i32) {
    %c0_i32 = arith.constant 0 : i32
    %c0_i32_0 = arith.constant 0 : i32
    %c0_i32_1 = arith.constant 0 : i32
    return %arg0, %c0_i32, %c0_i32_0 : i32, i32, i32
  }
}

</mosaic_0001>

<bundles_post_ra>
// kernel: inverted_residual_onesixth.1
= control target key start
LH: loop header
LB: loop body
LE: loop exit
PB: predicated region body
PF: predicated region fallthrough
CT: control target
= control target key end

     0   :  { %s4579_s27 = smov 0   ;;  %s6064_s0 = inlined_call_operand.vmem [shape: bf16[2,256,24], index: 0, kind: input, shape index: {}]   ;;  %s6065_s1 = inlined_call_operand.vmem [shape: bf16[24,48], index: 1, kind: input, shape index: {}]   ;;  %s6066_s2 = inlined_call_operand.vmem [shape: f32[1,48], index: 2, kind: input, shape index: {}]   ;;  %s6067_s3 = inlined_call_operand.vmem [shape: bf16[5,48,48], index: 3, kind: input, shape index: {}]   ;;  %s6068_s4 = inlined_call_operand.vmem [shape: f32[1,48], index: 4, kind: input, shape index: {}]   ;;  %s6069_s5 = inlined_call_operand.vmem [shape: bf16[48,128], index: 5, kind: input, shape index: {}]   ;;  %s6070_s6 = inlined_call_operand.vmem [shape: f32[1,128], index: 6, kind: input, shape index: {}]   ;;  %s6071_s7 = inlined_call_operand.vmem [shape: bf16[24,128], index: 7, kind: input, shape index: {}]   ;;  %s6072_s8 = inlined_call_operand.vmem [shape: bf16[2,256,128], index: 8, kind: output, shape index: {}]  }
   0x1 LB: > { %s3647_s28 = sadd.s32 4294967295, %s4531_s27   ;;  %p3651_p0 = scmp.ge.s32.totalorder %s4531_s27, 1  ;;  %s4531_s27 = sphi %s4579_s27, %s18_s27  }
   0x2   : > { %p262_p1 = scmp.lt.s32.totalorder %s4531_s27, 3 }
   0x4   : > { %p263_p2 = pnand %p3651_p0, %p262_p1 }
   0x6   : > { %266 = sbr.rel (%p263_p2) target bundleno = 894 (0x37e), region = 52 }
   0xb   : > { %v4471_v0 = vld [vmem:[%s6065_s1 + $0x8] ss:$0 sps:$4 sm:$0xff]   ;;  %vm487_vm0 = vcmask 1043456   ;;  %v4472_v1 = vld [vmem:[%s6065_s1] sm:$0xff]   ;;  %p296_p3 = scmp.lt.s32.totalorder %s3647_s28, 1  ;;  %vm438_vm1 = vcmask 195584   ;;  %v732_v31 = vlaneseq }
   0xc   : > { %4460 = vmatprep.subr.msk.bf16.mxu0 %vm487_vm0, %v4471_v0  ;;  %v489_v2 = vsel %vm487_vm0, %v4471_v0, 0  ;;  %v4489_v19 = vld [vmem:[%s6067_s3 + $0x70] sm:$0xff]   ;;  %v4490_v20 = vld [vmem:[%s6067_s3 + $0x68] sm:$0xff]   ;;  %v4491_v21 = vld [vmem:[%s6067_s3 + $0x60] sm:$0xff]   ;;  %vm1630_vm3 = vcmask 392192  }
   0xd   : > { %4161 = vmatpush3.bf16.msra.mxu0 %v489_v2  ;;  %s6280_s28 = smov (!%p296_p3, %s3647_s28), 1  ;;  %v4492_v22 = vld [vmem:[%s6067_s3 + $0x10] sm:$0xff]   ;;  %v4493_v23 = vld [vmem:[%s6067_s3 + $0x8] sm:$0xff]   ;;  %v4494_v24 = vld [vmem:[%s6067_s3 + $0x40] sm:$0xff]   ;;  %v4672_v36 = vshrl.u32 %v732_v31, 7 }
   0xe   : > { %4162 = vmatprep.subr.bf16.mxu0 %v4472_v1  ;;  %s3881_s11 = sshll.u32 %s6280_s28, 7  ;;  %4196 = vmatprep.subr.bf16.mxu1 %v4492_v22  ;;  %v4495_v25 = vld [vmem:[%s6067_s3] sm:$0xff]   ;;  %v4661_v26 = vld [vmem:[%s6067_s3 + $0x28] sm:$0xff]   ;;  %v4496_v0 = vld [vmem:[%s6067_s3 + $0x38] sm:$0xff]  }
   0xf   : > { %s4603_s14 = scalar_lea.vmem %s6064_s0, %s3881_s11  ;;  %4197 = vmatpush3.bf16.msra.mxu1 %v4492_v22  ;;  %v4667_v27 = vld [vmem:[%s6066_s2] ss:$0 sm:$0xff]  ;;  %vm1358_vm2 = vcmp.lt.s32.totalorder %v4672_v36, 7  ;;  %v736_v46 = vadd.s32 24, %v4672_v36  ;;  %vm1213_vm6 = vcmp.lt.s32.totalorder %v4672_v36, 1  ;;  %s6007_s26 = scalar_lea.vmem %s6072_s8, %s3881_s11 }
  0x10   : > { %v4473_v3 = vld [vmem:[%s4603_s14] sm:$0xff]   ;;  %v4474_v4 = vld [vmem:[%s4603_s14 + $0x8] sm:$0xff]   ;;  %v4475_v5 = vld [vmem:[%s4603_s14 + $0x10] sm:$0xff]   ;;  %4198 = vmatprep.subr.bf16.mxu1 %v4493_v23 }
  0x11   : > { %4163 = vmatpush3.bf16.msra.mxu0 %v4472_v1  ;;  %4164 = vmatprep.mubr.msk.bf16.mxu0 %vm438_vm1, %v4473_v3  ;;  %v4476_v6 = vld [vmem:[%s4603_s14 + $0x18] sm:$0xff]   ;;  %v4477_v7 = vld [vmem:[%s4603_s14 + $0x20] sm:$0xff]   ;;  %v4478_v8 = vld [vmem:[%s4603_s14 + $0x28] sm:$0xff]   ;;  %v790_v59 = vand.u32 15, %v736_v46 }
  0x12   : > { %v4479_v9 = vld [vmem:[%s4603_s14 + $0x30] sm:$0xff]   ;;  %v4480_v10 = vld [vmem:[%s4603_s14 + $0x38] sm:$0xff]   ;;  %v4481_v11 = vld [vmem:[%s4603_s14 + $0x40] sm:$0xff]   ;;  %4234 = vmatprep.subr.bf16.mxu0 %v4489_v19 }
  0x13   : > { %v4482_v12 = vld [vmem:[%s4603_s14 + $0x48] sm:$0xff]   ;;  %v4483_v13 = vld [vmem:[%s4603_s14 + $0x50] sm:$0xff]   ;;  %v4484_v14 = vld [vmem:[%s4603_s14 + $0x58] sm:$0xff]   ;;  %4199 = vmatpush3.bf16.msra.mxu1 %v4493_v23  ;;  %vm4716_vm4 = vcmp.ne.s32.totalorder %v790_v59, 15 }
  0x14   : > { %4165 = vmatmul.mubr.msk.bf16.vlgmr.msra.gmra.mxu0 %vm438_vm1, %v4474_v4  ;;  %v4485_v15 = vld [vmem:[%s4603_s14 + $0x60] sm:$0xff]   ;;  %v4486_v16 = vld [vmem:[%s4603_s14 + $0x68] sm:$0xff]   ;;  %v4487_v17 = vld [vmem:[%s4603_s14 + $0x70] sm:$0xff]   ;;  %4200 = vmatprep.subr.bf16.mxu1 %v4495_v25 }
  0x15   : > { %4168 = vmatprep.mubr.msk.bf16.mxu0 %vm438_vm1, %v4475_v5  ;;  %v4488_v18 = vld [vmem:[%s4603_s14 + $0x78] sm:$0xff]   ;;  %4235 = vmatpush3.bf16.msra.mxu0 %v4489_v19 }
  0x16   : > { %4236 = vmatprep.subr.bf16.mxu0 %v4490_v20 }
  0x17   : > { %4201 = vmatpush3.bf16.msra.mxu1 %v4495_v25 }
  0x18   : > { %4272 = vmatprep.subr.bf16.mxu1 %v4661_v26 }
  0x19   : > { %4237 = vmatpush3.bf16.msra.mxu0 %v4490_v20 }
  0x1a   : > { %4238 = vmatprep.subr.bf16.mxu0 %v4491_v21 }
  0x1c   : > { %4169 = vmatmul.mubr.msk.bf16.gmra.mxu0 %vm438_vm1, %v4476_v6 }
  0x1d   : > { %4172 = vmatprep.mubr.msk.bf16.mxu0 %vm438_vm1, %v4477_v7  ;;  %4239 = vmatpush3.bf16.msra.mxu0 %v4491_v21 }
  0x1e   : > { %4310 = vmatprep.subr.bf16.mxu0 %v4494_v24 }
  0x24   : > { %4173 = vmatmul.mubr.msk.bf16.gmra.mxu0 %vm438_vm1, %v4478_v8 }
  0x25   : > { %4176 = vmatprep.mubr.msk.bf16.mxu0 %vm438_vm1, %v4479_v9 }
  0x2c   : > { %4177 = vmatmul.mubr.msk.bf16.gmra.mxu0 %vm438_vm1, %v4480_v10 }
  0x2d   : > { %4180 = vmatprep.mubr.msk.bf16.mxu0 %vm438_vm1, %v4481_v11 }
  0x34   : > { %4181 = vmatmul.mubr.msk.bf16.gmra.mxu0 %vm438_vm1, %v4482_v12 }
  0x35   : > { %4184 = vmatprep.mubr.msk.bf16.mxu0 %vm438_vm1, %v4483_v13  ;;  %v4498_v13 = vld [vmem:[%s6067_s3 + $0x30] sm:$0xff]  }
  0x3c   : > { %4185 = vmatmul.mubr.msk.bf16.gmra.mxu0 %vm438_vm1, %v4484_v14  ;;  %v734_v14 = vadd.s32 8, %v4672_v36 }
  0x3d   : > { %4188 = vmatprep.mubr.msk.bf16.mxu0 %vm438_vm1, %v4485_v15 }
  0x44   : > { %4189 = vmatmul.mubr.msk.bf16.gmra.mxu0 %vm438_vm1, %v4486_v16 }
  0x45   : > { %4192 = vmatprep.mubr.msk.bf16.mxu0 %vm438_vm1, %v4487_v17 }
  0x4c   : > { %4193 = vmatmul.mubr.msk.bf16.gmra.mxu0 %vm438_vm1, %v4488_v18  ;;  %v4741_v18 = vadd.s32 16, %v4672_v36 }
  0xd4   : > { %v4166_v28 = vpop.f32.mrf.mxu0 }
  0xd5   : > { %v534_v29 = vadd.f32 %v4166_v28, %v4667_v27  ;;  %v4756_v28 = vadd.s32 32, %v4672_v36 }
  0xd6   : > { %v525_v30 = vpop.f32.mrf.mxu0 }
  0xd7   : > { %v654_v32 = vmax.f32 %v534_v29, 0.0  ;;  %v526_v33 = vadd.f32 %v4667_v27, %v525_v30 }
  0xd8   : > { %v4167_v34 = vpop.f32.mrf.mxu0 }
  0xd9   : > { %v537_v35 = vadd.f32 %v4167_v34, %v4667_v27  ;;  %v4674_v38 = vmin.f32 %v654_v32, 6.0  ;;  %v652_v40 = vmax.f32 %v526_v33, 0.0  ;;  %v776_v32 = vand.u32 15, %v734_v14 }
  0xda   : > { %v528_v37 = vpop.f32.mrf.mxu0 }
  0xdb   : > { %v655_v39 = vmax.f32 %v537_v35, 0.0  ;;  %v529_v41 = vadd.f32 %v4667_v27, %v528_v37  ;;  %v1328_v47 = vrot.slane %v4674_v38, 1  ;;  %v4683_v49 = vmin.f32 %v652_v40, 6.0 }
  0xdc   : > { %v4170_v42 = vpop.f32.mrf.mxu0  ;;  %v4766_v35 = vadd.s32 48, %v4672_v36  ;;  %v4769_v37 = vadd.s32 64, %v4672_v36  ;;  %vm4798_vm5 = vcmp.ne.s32.totalorder %v776_v32, 15 }
  0xdd   : > { %v4677_v43 = vmin.f32 %v655_v39, 6.0  ;;  %v653_v44 = vmax.f32 %v529_v41, 0.0  ;;  %v550_v54 = vadd.f32 %v4170_v42, %v4667_v27  ;;  %v6073_v1 = vrot.slane %v4683_v49, 1 }
  0xde   : > { %v541_v45 = vpop.f32.mrf.mxu0  ;;  %v4772_v39 = vadd.s32 80, %v4672_v36  ;;  %v783_v42 = vand.u32 15, %v4741_v18 }
  0xdf   : > { %v1329_v48 = vrot.slane %v4677_v43, 1  ;;  %v4685_v50 = vmin.f32 %v653_v44, 6.0  ;;  %v542_v51 = vadd.f32 %v4667_v27, %v541_v45  ;;  %v4699_v61 = vpack.c.bf16 %v4677_v43, %v4674_v38 }
  0xe0   : > { %v4171_v52 = vpop.f32.mrf.mxu0  ;;  %v658_v5 = vmax.f32 %v550_v54, 0.0  ;;  %v4778_v44 = vadd.s32 96, %v4672_v36  ;;  %vm4858_vm7 = vcmp.ne.s32.totalorder %v783_v42, 0 }
  0xe1   : > { %v1387_v53 = vsel %vm1358_vm2, %v1328_v47, %v1329_v48  ;;  %v553_v55 = vadd.f32 %v4171_v52, %v4667_v27  ;;  %v4694_v56 = vpack.c.bf16 %v4685_v50, %v4683_v49  ;;  %v1327_v57 = vrot.slane %v4685_v50, 1 }
  0xe2   : > { %v656_v58 = vmax.f32 %v542_v51, 0.0  ;;  %v544_v60 = vpop.f32.mrf.mxu0  ;;  %v4743_v19 = vmin.f32 %v658_v5, 6.0  ;;  %6111 = vst [vmem:[#allocation5_spill] sm:$0xff] %v4778_v44  ;;  %v4786_v51 = vadd.s32 72, %v4672_v36 }
  0xe3   : > { %v659_v62 = vmax.f32 %v553_v55, 0.0  ;;  %v545_v63 = vadd.f32 %v4667_v27, %v544_v60  ;;  %4240 = vmatprep.mubr.msk.bf16.mxu0 %vm1630_vm3, %v4694_v56  ;;  %v4712_v4 = vsel %vm1358_vm2, %v1327_v57, %v1328_v47  ;;  %v4725_v10 = vsel %vm1358_vm2, %v6073_v1, %v1327_v57 }
  0xe4   : > { %v4706_v2 = vmin.f32 %v656_v58, 6.0  ;;  %v4174_v3 = vpop.f32.mrf.mxu0  ;;  %4241 = vmatmul.mubr.msk.bf16.vlgmr.msra.gmra.mxu0 %vm1630_vm3, %v4699_v61  ;;  %v738_v47 = vadd.s32 40, %v4672_v36  ;;  %v4909_v58 = vadd.s32 232, %v4672_v36 }
  0xe5   : > { %v657_v6 = vmax.f32 %v545_v63, 0.0  ;;  %4311 = vmatpush3.bf16.msra.mxu0 %v4494_v24  ;;  %v4727_v11 = vmin.f32 %v659_v62, 6.0  ;;  %v566_v22 = vadd.f32 %v4174_v3, %v4667_v27 }
  0xe6   : > { %v1330_v8 = vrot.slane %v4706_v2, 1  ;;  %v557_v9 = vpop.f32.mrf.mxu0  ;;  %4312 = vmatprep.subr.bf16.mxu0 %v4496_v0  ;;  %v804_v14 = vand.u32 15, %v738_v47  ;;  %v4844_v47 = vadd.s32 152, %v4672_v36 }
  0xe7   : > { %v4729_v12 = vmin.f32 %v657_v6, 6.0  ;;  %v558_v16 = vadd.f32 %v4667_v27, %v557_v9  ;;  %v4760_v29 = vpack.c.bf16 %v4727_v11, %v4743_v19  ;;  %v662_v40 = vmax.f32 %v566_v22, 0.0 }
  0xe8   : > { %v1386_v15 = vsel %vm1358_vm2, %v1329_v48, %v1330_v8  ;;  %v4175_v17 = vpop.f32.mrf.mxu0  ;;  %v4783_v48 = vadd.s32 56, %v4672_v36  ;;  %vm4874_vm8 = vcmp.ne.s32.totalorder %v804_v14, 15 }
  0xe9   : > { %v1394_v20 = vsel %vm4716_vm4, %v1386_v15, 0.0  ;;  %v4749_v21 = vpack.c.bf16 %v4729_v12, %v4706_v2  ;;  %v569_v24 = vadd.f32 %v4175_v17, %v4667_v27  ;;  %4313 = vmatpush3.bf16.msra.mxu0 %v4496_v0  ;;  %6110 = vst [vmem:[#allocation4_spill] sm:$0xff] %v4760_v29  ;;  %v660_v30 = vmax.f32 %v558_v16, 0.0 }
  0xea   : > { %v4752_v23 = vpack.c.bf16 %v1394_v20, %v1387_v53  ;;  %v560_v25 = vpop.f32.mrf.mxu0  ;;  %4314 = vmatprep.subr.bf16.mxu0 %v4498_v13  ;;  %v4802_v63 = vmin.f32 %v662_v40, 6.0 }
  0xeb   : > { %6108 = vst [vmem:[#allocation2_spill] sm:$0xff] %v4749_v21  ;;  %v561_v31 = vadd.f32 %v4667_v27, %v560_v25  ;;  %4244 = vmatprep.mubr.msk.bf16.mxu0 %vm1630_vm3, %v4749_v21  ;;  %v663_v33 = vmax.f32 %v569_v24, 0.0  ;;  %v4788_v52 = vmin.f32 %v660_v30, 6.0  ;;  %v4824_v24 = vadd.s32 88, %v4672_v36 }
  0xec   : > { %6109 = vst [vmem:[#allocation3_spill] sm:$0xff] %v4752_v23  ;;  %v4178_v34 = vpop.f32.mrf.mxu0  ;;  %4245 = vmatmul.mubr.msk.bf16.gmra.mxu0 %vm1630_vm3, %v4760_v29  ;;  %v4827_v25 = vadd.s32 104, %v4672_v36  ;;  %v4830_v30 = vadd.s32 120, %v4672_v36 }
  0xed   : > { %v661_v41 = vmax.f32 %v561_v31, 0.0  ;;  %4315 = vmatpush3.bf16.msra.mxu0 %v4498_v13  ;;  %v4790_v53 = vmin.f32 %v663_v33, 6.0  ;;  %v582_v3 = vadd.f32 %v4178_v34, %v4667_v27  ;;  %v4812_v13 = vadd.s32 112, %v4672_v36 }
  0xee   : > { %v573_v45 = vpop.f32.mrf.mxu0  ;;  %v1392_v34 = vsel %vm4798_vm5, %v4712_v4, 0.0  ;;  %v1182_v33 = vrot.slane %v4685_v50, 7  ;;  %v1183_v50 = vrot.slane %v4674_v38, 7 }
  0xef   : > { %v4792_v54 = vmin.f32 %v661_v41, 6.0  ;;  %v574_v55 = vadd.f32 %v4667_v27, %v573_v45  ;;  %6115 = vst [vmem:[#allocation7_spill] sm:$0xff] %v4812_v13  ;;  %v4816_v15 = vpack.c.bf16 %v4790_v53, %v4802_v63  ;;  %v666_v31 = vmax.f32 %v582_v3, 0.0 }
  0xf0   : > { %v4179_v57 = vpop.f32.mrf.mxu0  ;;  %v4841_v45 = vadd.s32 136, %v4672_v36  ;;  %v4856_v4 = vpack.c.bf16 %v1392_v34, %v4725_v10 }
  0xf1   : > { %v4806_v0 = vpack.c.bf16 %v4792_v54, %v4788_v52  ;;  %v664_v6 = vmax.f32 %v574_v55, 0.0  ;;  %v585_v7 = vadd.f32 %v4179_v57, %v4667_v27  ;;  %6116 = vst [vmem:[#allocation8_spill] sm:$0xff] %v4816_v15  ;;  %v4847_v55 = vadd.s32 168, %v4672_v36 }
  0xf2   : > { %v576_v9 = vpop.f32.mrf.mxu0  ;;  %6117 = vst [vmem:[#allocation9_spill] sm:$0xff] %v4856_v4  ;;  %v4866_v5 = vmin.f32 %v666_v31, 6.0  ;;  %v6074_v31 = vrot.slane %v4743_v19, 1  ;;  %v1243_v4 = vsel %vm1213_vm6, %v1182_v33, %v1183_v50 }
  0xf3   : > { %6114 = vst [vmem:[#allocation6_spill] sm:$0xff] %v4806_v0  ;;  %v577_v16 = vadd.f32 %v4667_v27, %v576_v9  ;;  %4248 = vmatprep.mubr.msk.bf16.mxu0 %vm1630_vm3, %v4806_v0  ;;  %v667_v20 = vmax.f32 %v585_v7, 0.0  ;;  %v4838_v40 = vmin.f32 %v664_v6, 6.0 }
  0xf4   : > { %v4182_v22 = vpop.f32.mrf.mxu0  ;;  %4249 = vmatmul.mubr.msk.bf16.gmra.mxu0 %vm1630_vm3, %v4816_v15 }
  0xf5   : > { %v665_v32 = vmax.f32 %v577_v16, 0.0  ;;  %v4849_v57 = vmin.f32 %v667_v20, 6.0  ;;  %v598_v10 = vadd.f32 %v4182_v22, %v4667_v27  ;;  %v4891_v20 = vadd.s32 184, %v4672_v36 }
  0xf6   : > { %v589_v41 = vpop.f32.mrf.mxu0  ;;  %v4894_v16 = vadd.s32 200, %v4672_v36 }
  0xf7   : > { %v4851_v3 = vmin.f32 %v665_v32, 6.0  ;;  %v590_v7 = vadd.f32 %v4667_v27, %v589_v41  ;;  %v1331_v32 = vrot.slane %v4729_v12, 1  ;;  %v4883_v9 = vpack.c.bf16 %v4849_v57, %v4866_v5 }
  0xf8   : > { %v4183_v62 = vpop.f32.mrf.mxu0  ;;  %v670_v18 = vmax.f32 %v598_v10, 0.0  ;;  %v4912_v10 = vadd.s32 248, %v4672_v36 }
  0xf9   : > { %v4870_v41 = vpack.c.bf16 %v4851_v3, %v4838_v40  ;;  %v668_v42 = vmax.f32 %v590_v7, 0.0  ;;  %v601_v34 = vadd.f32 %v4183_v62, %v4667_v27  ;;  %6123 = vst [vmem:[#allocation11_spill] sm:$0xff] %v4883_v9  ;;  %v1385_v38 = vsel %vm1358_vm2, %v1330_v8, %v1331_v32 }
  0xfa   : > { %v592_v1 = vpop.f32.mrf.mxu0 }
  0xfb   : > { %6120 = vst [vmem:[#allocation10_spill] sm:$0xff] %v4870_v41  ;;  %v593_v22 = vadd.f32 %v4667_v27, %v592_v1  ;;  %4252 = vmatprep.mubr.msk.bf16.mxu0 %vm1630_vm3, %v4870_v41  ;;  %v671_v7 = vmax.f32 %v601_v34, 0.0  ;;  %v1384_v1 = vsel %vm1358_vm2, %v1331_v32, %v6074_v31  ;;  %v4903_v34 = vadd.s32 216, %v4672_v36 }
  0xfc   : > { %v4186_v62 = vpop.f32.mrf.mxu0  ;;  %4253 = vmatmul.mubr.msk.bf16.gmra.mxu0 %vm1630_vm3, %v4883_v9  ;;  %v4906_v14 = vmin.f32 %v668_v42, 6.0  ;;  %v1184_v42 = vrot.slane %v4677_v43, 7  ;;  %v6124_v9 = vand.u32 15, %v4756_v28  ;;  %v4940_v32 = vmin.f32 %v670_v18, 6.0 }
  0xfd   : > { %v669_v17 = vmax.f32 %v593_v22, 0.0  ;;  %v4914_v22 = vmin.f32 %v671_v7, 6.0  ;;  %v614_v28 = vadd.f32 %v4186_v62, %v4667_v27  ;;  %v1186_v62 = vrot.slane %v4729_v12, 7 }
  0xfe   : > { %v605_v59 = vpop.f32.mrf.mxu0  ;;  %vm4928_vm9 = vcmp.ne.s32.totalorder %v6124_v9, 0  ;;  %v1242_v9 = vsel %vm1213_vm6, %v1183_v50, %v1184_v42  ;;  %v1187_v43 = vrot.slane %v4743_v19, 7  ;;  %v1188_v12 = vrot.slane %v4727_v11, 7 }
  0xff   : > { %v4916_v46 = vmin.f32 %v669_v17, 6.0  ;;  %v606_v31 = vadd.f32 %v4667_v27, %v605_v59  ;;  %v6127_v17 = vand.u32 15, %v4766_v35  ;;  %v4954_v18 = vpack.c.bf16 %v4914_v22, %v4940_v32 }
 0x100   : > { %v4187_v23 = vpop.f32.mrf.mxu0  ;;  %v674_v21 = vmax.f32 %v614_v28, 0.0  ;;  %v6135_v28 = vrot.slane %v4683_v49, 7 }
 0x101   : > { %vm4934_vm10 = vcmp.ne.s32.totalorder %v6127_v17, 0  ;;  %v4944_v41 = vpack.c.bf16 %v4916_v46, %v4906_v14  ;;  %v672_v15 = vmax.f32 %v606_v31, 0.0  ;;  %v617_v35 = vadd.f32 %v4187_v23, %v4667_v27  ;;  %6131 = vst [vmem:[#allocation13_spill] sm:$0xff] %v4954_v18 }
 0x102   : > { %v608_v17 = vpop.f32.mrf.mxu0  ;;  %v1248_v31 = vsel %vm4858_vm7, %v1243_v4, 0.0  ;;  %v1185_v23 = vrot.slane %v4706_v2, 7  ;;  %v1396_v2 = vsel %vm4874_vm8, %v1384_v1, 0.0  ;;  %v6162_v4 = vand.u32 15, %v4830_v30 }
 0x103   : > { %6130 = vst [vmem:[#allocation12_spill] sm:$0xff] %v4944_v41  ;;  %v609_v29 = vadd.f32 %v4667_v27, %v608_v17  ;;  %4256 = vmatprep.mubr.msk.bf16.mxu0 %vm1630_vm3, %v4944_v41  ;;  %v675_v0 = vmax.f32 %v617_v35, 0.0  ;;  %v6132_v17 = vand.u32 15, %v4769_v37  ;;  %v4977_v6 = vmin.f32 %v672_v15, 6.0 }
 0x104   : > { %v4190_v8 = vpop.f32.mrf.mxu0  ;;  %4257 = vmatmul.mubr.msk.bf16.gmra.mxu0 %vm1630_vm3, %v4954_v18  ;;  %v4985_v35 = vpack.c.bf16 %v1242_v9, %v1248_v31  ;;  %v4992_v1 = vpack.c.bf16 %v1396_v2, %v1385_v38  ;;  %v1333_v15 = vrot.slane %v4727_v11, 1  ;;  %v1189_v18 = vrot.slane %v4788_v52, 7 }
 0x105   : > { %v673_v13 = vmax.f32 %v609_v29, 0.0  ;;  %vm4970_vm11 = vcmp.ne.s32.totalorder %v6132_v17, 0  ;;  %v4983_v29 = vsel %vm1213_vm6, %v6135_v28, %v1182_v33  ;;  %v4987_v37 = vmin.f32 %v675_v0, 6.0 }
 0x106   : > { %v621_v50 = vpop.f32.mrf.mxu0  ;;  %6137 = vst [vmem:[#allocation15_spill] sm:$0xff] %v4992_v1  ;;  %v1241_v44 = vsel %vm1213_vm6, %v1184_v42, %v1185_v23  ;;  %v1239_v33 = vsel %vm1213_vm6, %v1186_v62, %v1187_v43  ;;  %v5001_v9 = vmin.f32 %v674_v21, 6.0  ;;  %v630_v38 = vadd.f32 %v4190_v8, %v4667_v27 }
 0x107   : > { %6136 = vst [vmem:[#allocation14_spill] sm:$0xff] %v4987_v37  ;;  %v4989_v17 = vmin.f32 %v673_v13, 6.0  ;;  %v622_v60 = vadd.f32 %v4667_v27, %v621_v50  ;;  %v1240_v42 = vsel %vm1213_vm6, %v1185_v23, %v1186_v62  ;;  %v6139_v28 = vand.u32 15, %v4783_v48 }
 0x108   : > { %v4191_v41 = vpop.f32.mrf.mxu0  ;;  %v5020_v0 = vpack.c.bf16 %v4987_v37, %v5001_v9  ;;  %v1252_v23 = vsel %vm4934_vm10, %v1239_v33, 0.0  ;;  %v1238_v11 = vsel %vm1213_vm6, %v1187_v43, %v1188_v12  ;;  %v678_v7 = vmax.f32 %v630_v38, 0.0 }
 0x109   : > { %v5005_v13 = vpack.c.bf16 %v4989_v17, %v4977_v6  ;;  %v676_v31 = vmax.f32 %v622_v60, 0.0  ;;  %v633_v2 = vadd.f32 %v4191_v41, %v4667_v27  ;;  %vm5014_vm12 = vcmp.ne.s32.totalorder %v6139_v28, 15 }
 0x10a   : > { %v624_v50 = vpop.f32.mrf.mxu0  ;;  %6142 = vst [vmem:[#allocation17_spill] sm:$0xff] %v5020_v0  ;;  %v1250_v41 = vsel %vm4928_vm9, %v1241_v44, 0.0  ;;  %v1237_v59 = vsel %vm1213_vm6, %v1188_v12, %v1189_v18  ;;  %v6146_v33 = vrot.slane %v4788_v52, 1  ;;  %v5051_v48 = vpack.c.bf16 %v1238_v11, %v1252_v23 }
 0x10b   : > { %6138 = vst [vmem:[#allocation16_spill] sm:$0xff] %v5005_v13  ;;  %v625_v8 = vadd.f32 %v4667_v27, %v624_v50  ;;  %4260 = vmatprep.mubr.msk.bf16.mxu0 %vm1630_vm3, %v5005_v13  ;;  %v679_v60 = vmax.f32 %v633_v2, 0.0  ;;  %v6143_v50 = vand.u32 15, %v4786_v51  ;;  %v5047_v43 = vmin.f32 %v676_v31, 6.0 }
 0x10c   : > { %v4194_v28 = vpop.f32.mrf.mxu0  ;;  %4261 = vmatmul.mubr.msk.bf16.gmra.mxu0 %vm1630_vm3, %v5020_v0  ;;  %v1382_v2 = vsel %vm1358_vm2, %v1333_v15, %v6146_v33  ;;  %v6147_v38 = vrot.slane %v4792_v54, 7  ;;  %v6149_v33 = vrot.slane %v4743_v19, 1  ;;  %v1335_v11 = vrot.slane %v4792_v54, 1 }
 0x10d   : > { %vm5035_vm13 = vcmp.ne.s32.totalorder %v6143_v50, 15  ;;  %v677_v44 = vmax.f32 %v625_v8, 0.0  ;;  %v5049_v50 = vpack.c.bf16 %v1240_v42, %v1250_v41  ;;  %v5057_v62 = vmin.f32 %v679_v60, 6.0 }
 0x10e   : > { %v637_v51 = vpop.f32.mrf.mxu0  ;;  %v1236_v8 = vsel %vm1213_vm6, %v1189_v18, %v6147_v38  ;;  %v1383_v31 = vsel %vm1358_vm2, %v6149_v33, %v1333_v15  ;;  %v646_v41 = vadd.f32 %v4194_v28, %v4667_v27  ;;  %v6150_v18 = vand.u32 15, %v4672_v36 }
 0x10f   : > { %6148 = vst [vmem:[#allocation18_spill] sm:$0xff] %v5057_v62  ;;  %v5059_v12 = vmin.f32 %v677_v44, 6.0  ;;  %v638_v0 = vadd.f32 %v4667_v27, %v637_v51  ;;  %v1254_v44 = vsel %vm4970_vm11, %v1237_v59, 0.0  ;;  %v5078_v51 = vmin.f32 %v678_v7, 6.0 }
 0x110   : > { %v4195_v23 = vpop.f32.mrf.mxu0  ;;  %vm5071_vm14 = vcmp.ne.s32.totalorder %v6150_v18, 0  ;;  %v5084_v38 = vpack.c.bf16 %v1236_v8, %v1254_v44  ;;  %v6155_v28 = vand.u32 15, %v4824_v24  ;;  %v1339_v13 = vrot.slane %v4851_v3, 1 }
 0x111   : > { %v5082_v15 = vpack.c.bf16 %v5059_v12, %v5047_v43  ;;  %v680_v59 = vmax.f32 %v638_v0, 0.0  ;;  %v649_v7 = vadd.f32 %v4195_v23, %v4667_v27  ;;  %v5099_v8 = vpack.c.bf16 %v5057_v62, %v5078_v51 }
 0x112   : > { %6154 = vst [vmem:[#allocation20_spill] sm:$0xff] %v5084_v38  ;;  %vm5088_vm15 = vcmp.ne.s32.totalorder %v6155_v28, 15  ;;  %v640_v19 = vpop.f32.mrf.mxu0  ;;  %v6159_v44 = vand.u32 15, %v4827_v25  ;;  %v682_v18 = vmax.f32 %v646_v41, 0.0  ;;  %vm5114_vm5 = vcmp.ne.s32.totalorder %v6162_v4, 15  ;;  %v4500_v25 = vld [vmem:[%s6067_s3 + $0x18] sm:$0xff]  }
 0x113   : > { %6153 = vst [vmem:[#allocation19_spill] sm:$0xff] %v5082_v15  ;;  %6158 = vst [vmem:[#allocation21_spill] sm:$0xff] %v5099_v8  ;;  %v641_v24 = vadd.f32 %v4667_v27, %v640_v19  ;;  %4264 = vmatprep.mubr.msk.bf16.mxu0 %vm1630_vm3, %v5082_v15  ;;  %v683_v42 = vmax.f32 %v649_v7, 0.0  ;;  %v6165_v27 = vand.u32 15, %v4841_v45  ;;  %v1398_v41 = vsel %vm5014_vm12, %v1382_v2, 0.0 }
 0x114   : > { %vm5106_vm4 = vcmp.ne.s32.totalorder %v6159_v44, 15  ;;  %4265 = vmatmul.mubr.msk.bf16.gmra.mxu0 %vm1630_vm3, %v5099_v8  ;;  %v6168_v30 = vrot.slane %v4802_v63, 1  ;;  %v1343_v45 = vrot.slane %v4916_v46, 1  ;;  %v5147_v2 = vpack.c.bf16 %v1398_v41, %v1383_v31 }
 0x115   : > { %vm5120_vm7 = vcmp.ne.s32.totalorder %v6165_v27, 15  ;;  %v681_v44 = vmax.f32 %v641_v24, 0.0  ;;  %v5135_v27 = vmin.f32 %v680_v59, 6.0  ;;  %v5137_v23 = vmin.f32 %v683_v42, 6.0 }
 0x116   : > { %v1380_v4 = vsel %vm1358_vm2, %v1335_v11, %v6168_v30  ;;  %v6169_v24 = vand.u32 15, %v4844_v47  ;;  %6172 = vst [vmem:[#allocation22_spill] sm:$0xff] %v5147_v2  ;;  %v6173_v30 = vrot.slane %v4788_v52, 1  ;;  %v6174_v42 = vand.u32 15, %v4847_v55 }
 0x117   : > { %v5145_v21 = vmin.f32 %v681_v44, 6.0  ;;  %v1400_v59 = vsel %vm5035_vm13, %v1380_v4, 0.0  ;;  %v1349_v44 = vrot.slane %v4987_v37, 1  ;;  %v5163_v31 = vmin.f32 %v682_v18, 6.0 }
 0x118   : > { %vm5141_vm8 = vcmp.ne.s32.totalorder %v6169_v24, 15  ;;  %v1381_v28 = vsel %vm1358_vm2, %v6173_v30, %v1335_v11  ;;  %vm5157_vm9 = vcmp.ne.s32.totalorder %v6174_v42, 15  ;;  %v1346_v24 = vrot.slane %v4977_v6, 1 }
 0x119   : > { %v6101_v52 = vrot.slane %v5137_v23, 7  ;;  %v6177_v41 = vand.u32 15, %v4891_v20  ;;  %v1347_v55 = vrot.slane %v4989_v17, 1  ;;  %v1350_v4 = vrot.slane %v5047_v43, 1 }
 0x11a   : > { %v5177_v30 = vpack.c.bf16 %v5145_v21, %v5135_v27  ;;  %v6181_v18 = vand.u32 15, %v4894_v16  ;;  %v1353_v20 = vrot.slane %v5057_v62, 1  ;;  %v5192_v7 = vpack.c.bf16 %v1400_v59, %v1381_v28 }
 0x11b   : > { %vm5168_vm10 = vcmp.ne.s32.totalorder %v6177_v41, 15  ;;  %v6184_v41 = vrot.slane %v4683_v49, 7  ;;  %v6186_v2 = vrot.slane %v4838_v40, 1  ;;  %v6187_v8 = vrot.slane %v4790_v53, 1 }
 0x11c   : > { %6180 = vst [vmem:[#allocation23_spill] sm:$0xff] %v5177_v30  ;;  %vm5181_vm11 = vcmp.ne.s32.totalorder %v6181_v18, 15  ;;  %6185 = vst [vmem:[#allocation24_spill] sm:$0xff] %v5192_v7  ;;  %v6188_v18 = vand.u32 15, %v4903_v34  ;;  %v1351_v62 = vrot.slane %v5059_v12, 1  ;;  %4268 = vmatprep.mubr.msk.bf16.mxu0 %vm1630_vm3, %v5177_v30  ;;  %v6192_v34 = vrot.slane %v4802_v63, 1 }
 0x11d   : > { %v1245_v1 = vsel %vm1213_vm6, %v6101_v52, %v6184_v41  ;;  %v1378_v16 = vsel %vm1358_vm2, %v6187_v8, %v6186_v2  ;;  %v5209_v41 = vpack.c.bf16 %v5137_v23, %v5163_v31  ;;  %v6193_v59 = vand.u32 15, %v4909_v58 }
 0x11e   : > { %vm5202_vm12 = vcmp.ne.s32.totalorder %v6188_v18, 15  ;;  %v1246_v28 = vsel %vm5071_vm14, %v1245_v1, 0.0  ;;  %v1379_v2 = vsel %vm1358_vm2, %v6192_v34, %v6187_v8  ;;  %v1356_v52 = vrot.slane %v5163_v31, 1  ;;  %v4499_v8 = vld [vmem:[%s6067_s3 + $0x20] sm:$0xff]  }
 0x11f   : > { %6191 = vst [vmem:[#allocation25_spill] sm:$0xff] %v5209_v41  ;;  %vm5223_vm13 = vcmp.ne.s32.totalorder %v6193_v59, 15  ;;  %v1354_v7 = vrot.slane %v5135_v27, 1  ;;  %v1278_v60 = vpack.c.bf16 %v4983_v29, %v1246_v28  ;;  %v1402_v1 = vsel %vm5088_vm15, %v1378_v16, 0.0  ;;  %4269 = vmatmul.mubr.msk.bf16.gmra.mxu0 %vm1630_vm3, %v5209_v41 }
 0x120   : > { %v6196_v30 = vand.u32 15, %v4912_v10  ;;  %v1357_v58 = vrot.slane %v5137_v23, 1  ;;  %v5244_v34 = vpack.c.bf16 %v1402_v1, %v1379_v2  ;;  %v6199_v29 = vrot.slane %v4866_v5, 1 }
 0x121   : > { %v6200_v33 = vrot.slane %v4838_v40, 1  ;;  %4202 = vmatprep.mubr.msk.bf16.mxu1 %vm1630_vm3, %v1278_v60  ;;  %v4533_v16 = vmov 0.0|0.0   ;;  %v6201_v2 = vrot.slane %v4906_v14, 1  ;;  %v6202_v59 = vrot.slane %v4849_v57, 1 }
 0x122   : > { %vm5234_vm14 = vcmp.ne.s32.totalorder %v6196_v30, 15  ;;  %v1376_v10 = vsel %vm1358_vm2, %v1339_v13, %v6199_v29  ;;  %4316 = vmatprep.mubr.bf16.mxu0 %v4533_v16  ;;  %v6204_v41 = vrot.slane %v4866_v5, 1  ;;  %v6205_v60 = vrot.slane %v4940_v32, 1  ;;  %4203 = vmatmul.mubr.msk.bf16.vlgmr.msra.gmra.mxu1 %vm1630_vm3, %v4985_v35 }
 0x123   : > { %v1377_v30 = vsel %vm1358_vm2, %v6200_v33, %v1339_v13  ;;  %v1404_v28 = vsel %vm5106_vm4, %v1376_v10, 0.0  ;;  %v1374_v1 = vsel %vm1358_vm2, %v6202_v59, %v6201_v2  ;;  %v6203_v29 = vmov %v6202_v59  ;;  %4273 = vmatpush3.bf16.msra.mxu1 %v4661_v26  ;;  %4206 = vmatprep.mubr.msk.bf16.mxu1 %vm1630_vm3, %v5049_v50 }
 0x124   : > { %v1375_v13 = vsel %vm1358_vm2, %v6204_v41, %v6203_v29  ;;  %v1372_v0 = vsel %vm1358_vm2, %v1343_v45, %v6205_v60  ;;  %v6206_v10 = vand.u32 15, %v4772_v39  ;;  %v5282_v2 = vpack.c.bf16 %v1404_v28, %v1377_v30  ;;  %4274 = vmatprep.subr.bf16.mxu1 %v4499_v8 }
 0x125   : > { %v1406_v59 = vsel %vm5114_vm5, %v1374_v1, 0.0  ;;  %v6209_v41 = vrot.slane %v4906_v14, 1  ;;  %v1408_v60 = vsel %vm5120_vm7, %v1372_v0, 0.0  ;;  %v1355_v35 = vrot.slane %v5145_v21, 1 }
 0x126   : > { %vm5278_vm15 = vcmp.ne.s32.totalorder %v6206_v10, 0  ;;  %v5296_v39 = vpack.c.bf16 %v1406_v59, %v1375_v13  ;;  %v6210_v38 = vrot.slane %v4914_v22, 1  ;;  %v6212_v26 = vrot.slane %v4940_v32, 1 }
 0x127   : > { %v1373_v29 = vsel %vm1358_vm2, %v6209_v41, %v1343_v45  ;;  %v6213_v13 = vrot.slane %v5001_v9, 1  ;;  %v1369_v10 = vsel %vm1358_vm2, %v1346_v24, %v1347_v55  ;;  %v1365_v47 = vsel %vm1358_vm2, %v1350_v4, %v1351_v62  ;;  %4275 = vmatpush3.bf16.msra.mxu1 %v4499_v8  ;;  %4317 = vmatmul.mubr.msk.bf16.vlgmr.msra.gmra.mxu0 %vm1630_vm3, %v4694_v56 }
 0x128   : > { %v5298_v30 = vpack.c.bf16 %v1408_v60, %v1373_v29  ;;  %v1370_v28 = vsel %vm1358_vm2, %v6210_v38, %v1346_v24  ;;  %v6211_v45 = vmov %v6210_v38  ;;  %v1366_v29 = vsel %vm1358_vm2, %v1349_v44, %v1350_v4  ;;  %4276 = vmatprep.subr.bf16.mxu1 %v4500_v25  ;;  %4320 = vmatprep.mubr.msk.bf16.mxu0 %vm1630_vm3, %v4699_v61 }
 0x129   : > { %v1371_v50 = vsel %vm1358_vm2, %v6212_v26, %v6211_v45  ;;  %v1410_v1 = vsel %vm5141_vm8, %v1370_v28, 0.0  ;;  %v1368_v0 = vsel %vm1358_vm2, %v1347_v55, %v6213_v13  ;;  %v6214_v60 = vmov %v6213_v13 }
 0x12a   : > { %v5321_v59 = vpack.c.bf16 %v1410_v1, %v1371_v50  ;;  %v1412_v41 = vsel %vm5157_vm9, %v1368_v0, 0.0  ;;  %v1367_v19 = vsel %vm1358_vm2, %v6214_v60, %v1349_v44  ;;  %v1414_v28 = vsel %vm5168_vm10, %v1366_v29, 0.0  ;;  %4207 = vmatmul.mubr.msk.bf16.gmra.mxu1 %vm1630_vm3, %v5051_v48  ;;  %v6221_v48 = vld [vmem:[#allocation5_spill] sm:$0xff] }
 0x12b   : > { %v5331_v38 = vpack.c.bf16 %v1412_v41, %v1369_v10  ;;  %v6215_v24 = vrot.slane %v5078_v51, 1  ;;  %v5341_v45 = vpack.c.bf16 %v1414_v28, %v1367_v19  ;;  %v1362_v44 = vsel %vm1358_vm2, %v1353_v20, %v1354_v7  ;;  %4277 = vmatpush3.bf16.msra.mxu1 %v4500_v25  ;;  %v6225_v28 = vld [vmem:[#allocation7_spill] sm:$0xff] }
 0x12c   : > { %v1418_v42 = vsel %vm5202_vm12, %v1362_v44, 0.0  ;;  %v1360_v8 = vsel %vm1358_vm2, %v1355_v35, %v1356_v52  ;;  %v1359_v13 = vsel %vm1358_vm2, %v1356_v52, %v1357_v58  ;;  %v6217_v15 = vrot.slane %v4683_v49, 1 }
 0x12d   : > { %v1364_v55 = vsel %vm1358_vm2, %v1351_v62, %v6215_v24  ;;  %v6216_v11 = vmov %v6215_v24  ;;  %v5356_v62 = vld [vmem:[%s6067_s3 + $0x58] sm:$0xff]   ;;  %v1420_v1 = vsel %vm5223_vm13, %v1360_v8, 0.0  ;;  %v1194_v10 = vrot.slane %v4851_v3, 7 }
 0x12e   : > { %v1416_v26 = vsel %vm5181_vm11, %v1364_v55, 0.0  ;;  %v1363_v50 = vsel %vm1358_vm2, %v6216_v11, %v1353_v20  ;;  %v1361_v20 = vsel %vm1358_vm2, %v1354_v7, %v1355_v35  ;;  %v1390_v0 = vsel %vm1358_vm2, %v1357_v58, %v6217_v15  ;;  %v6220_v58 = vld [vmem:[#allocation20_spill] sm:$0xff]  ;;  %4348 = vmatprep.subr.bf16.mxu1 %v5356_v62 }
 0x12f   : > { %v5358_v4 = vpack.c.bf16 %v1416_v26, %v1365_v47  ;;  %v5368_v56 = vpack.c.bf16 %v1418_v42, %v1363_v50  ;;  %v6218_v7 = vrot.slane %v4802_v63, 7  ;;  %v6219_v35 = vrot.slane %v4792_v54, 7  ;;  %4210 = vmatprep.mubr.msk.bf16.mxu1 %vm1630_vm3, %v6220_v58  ;;  %v6227_v26 = vld [vmem:[#allocation2_spill] sm:$0xff] }
 0x130   : > { %v5387_v41 = vpack.c.bf16 %v1420_v1, %v1361_v20  ;;  %v1422_v49 = vsel %vm5234_vm14, %v1390_v0, 0.0  ;;  %v1192_v52 = vrot.slane %v4790_v53, 7  ;;  %v6222_v29 = vand.u32 15, %v6221_v48  ;;  %4321 = vmatmul.mubr.msk.bf16.gmra.mxu0 %vm1630_vm3, %v6227_v26 }
 0x131   : > { %v1235_v18 = vsel %vm1213_vm6, %v6219_v35, %v6218_v7  ;;  %v5394_v3 = vpack.c.bf16 %v1422_v49, %v1359_v13  ;;  %v6223_v60 = vrot.slane %v4838_v40, 7  ;;  %v749_v53 = vadd.s32 128, %v4672_v36  ;;  %v6228_v40 = vld [vmem:[#allocation4_spill] sm:$0xff]  ;;  %v6229_v35 = vld [vmem:[#allocation6_spill] sm:$0xff] }
 0x132   : > { %v1256_v54 = vsel %vm5278_vm15, %v1235_v18, 0.0  ;;  %vm1161_vm2 = vcmp.ne.s32.totalorder %v6222_v29, 0  ;;  %v867_v24 = vand.u32 15, %v6225_v28  ;;  %v6226_v33 = vmov %v6218_v7  ;;  %4324 = vmatprep.mubr.msk.bf16.mxu0 %vm1630_vm3, %v6228_v40 }
 0x133   : > { %v1233_v37 = vsel %vm1213_vm6, %v1192_v52, %v6223_v60  ;;  %v6224_v19 = vmov %v6223_v60  ;;  %v1234_v55 = vsel %vm1213_vm6, %v6226_v33, %v1192_v52  ;;  %v1195_v47 = vrot.slane %v4866_v5, 7  ;;  %v6230_v52 = vld [vmem:[#allocation8_spill] sm:$0xff] }
 0x134   : > { %v1232_v25 = vsel %vm1213_vm6, %v6224_v19, %v1194_v10  ;;  %v1283_v44 = vpack.c.bf16 %v1234_v55, %v1256_v54  ;;  %v1258_v11 = vsel %vm1161_vm2, %v1233_v37, 0.0  ;;  %v1197_v50 = vrot.slane %v4906_v14, 7 }
 0x135   : > { %v1284_v42 = vpack.c.bf16 %v1232_v25, %v1258_v11  ;;  %v881_v8 = vand.u32 15, %v749_v53  ;;  %v1198_v20 = vrot.slane %v4916_v46, 7  ;;  %vm1163_vm4 = vcmp.ne.s32.totalorder %v867_v24, 0  ;;  %v6231_v24 = vld [vmem:[#allocation10_spill] sm:$0xff] }
 0x136   : > { %4211 = vmatmul.mubr.msk.bf16.gmra.mxu1 %vm1630_vm3, %v1283_v44  ;;  %v1231_v63 = vsel %vm1213_vm6, %v1194_v10, %v1195_v47  ;;  %v751_v5 = vadd.s32 144, %v4672_v36  ;;  %v1196_v1 = vrot.slane %v4849_v57, 7  ;;  %v753_v15 = vadd.s32 160, %v4672_v36 }
 0x137   : > { %4214 = vmatprep.mubr.msk.bf16.mxu1 %vm1630_vm3, %v1284_v42  ;;  %v1260_v14 = vsel %vm1163_vm4, %v1231_v63, 0.0  ;;  %vm1165_vm5 = vcmp.ne.s32.totalorder %v881_v8, 0  ;;  %v1228_v46 = vsel %vm1213_vm6, %v1197_v50, %v1198_v20  ;;  %v1199_v7 = vrot.slane %v4940_v32, 7  ;;  %v6233_v8 = vld [vmem:[#allocation14_spill] sm:$0xff] }
 0x138   : > { %v1229_v13 = vsel %vm1213_vm6, %v1196_v1, %v1197_v50  ;;  %v895_v0 = vand.u32 15, %v751_v5  ;;  %v1230_v10 = vsel %vm1213_vm6, %v1195_v47, %v1196_v1  ;;  %4325 = vmatmul.mubr.msk.bf16.gmra.mxu0 %vm1630_vm3, %v6229_v35  ;;  %v1201_v49 = vrot.slane %v4977_v6, 7  ;;  %v6232_v47 = vld [vmem:[#allocation11_spill] sm:$0xff] }
 0x139   : > { %v1285_v57 = vpack.c.bf16 %v1230_v10, %v1260_v14  ;;  %v1262_v18 = vsel %vm1165_vm5, %v1229_v13, 0.0  ;;  %4328 = vmatprep.mubr.msk.bf16.mxu0 %vm1630_vm3, %v6230_v52  ;;  %v909_v54 = vand.u32 15, %v753_v15  ;;  %v1202_v48 = vrot.slane %v4989_v17, 7  ;;  %v6234_v15 = vld [vmem:[#allocation12_spill] sm:$0xff] }
 0x13a   : > { %v1286_v58 = vpack.c.bf16 %v1228_v46, %v1262_v18  ;;  %vm1167_vm7 = vcmp.ne.s32.totalorder %v895_v0, 0  ;;  %v1227_v32 = vsel %vm1213_vm6, %v1198_v20, %v1199_v7  ;;  %v755_v29 = vadd.s32 176, %v4672_v36 }
 0x13b   : > { %v1200_v60 = vrot.slane %v4914_v22, 7  ;;  %v1264_v6 = vsel %vm1167_vm7, %v1227_v32, 0.0  ;;  %vm1169_vm8 = vcmp.ne.s32.totalorder %v909_v54, 0  ;;  %v757_v53 = vadd.s32 192, %v4672_v36  ;;  %v6236_v54 = vld [vmem:[#allocation18_spill] sm:$0xff] }
 0x13c   : > { %v1224_v17 = vsel %vm1213_vm6, %v1201_v49, %v1202_v48  ;;  %v923_v19 = vand.u32 15, %v755_v29  ;;  %v1203_v28 = vrot.slane %v5001_v9, 7  ;;  %v1205_v55 = vrot.slane %v5047_v43, 7 }
 0x13d   : > { %v1225_v37 = vsel %vm1213_vm6, %v1200_v60, %v1201_v49  ;;  %v1226_v25 = vsel %vm1213_vm6, %v1199_v7, %v1200_v60  ;;  %v937_v11 = vand.u32 15, %v757_v53  ;;  %v1206_v50 = vrot.slane %v5059_v12, 7  ;;  %v6235_v7 = vld [vmem:[#allocation13_spill] sm:$0xff] }
 0x13e   : > { %4215 = vmatmul.mubr.msk.bf16.gmra.mxu1 %vm1630_vm3, %v1285_v57  ;;  %v1287_v22 = vpack.c.bf16 %v1226_v25, %v1264_v6  ;;  %v1266_v33 = vsel %vm1169_vm8, %v1225_v37, 0.0  ;;  %vm1171_vm9 = vcmp.ne.s32.totalorder %v923_v19, 0  ;;  %v1223_v9 = vsel %vm1213_vm6, %v1202_v48, %v1203_v28  ;;  %v6237_v37 = vld [vmem:[#allocation16_spill] sm:$0xff]  ;;  %v6238_v19 = vld [vmem:[#allocation17_spill] sm:$0xff] }
 0x13f   : > { %4218 = vmatprep.mubr.msk.bf16.mxu1 %vm1630_vm3, %v1286_v58  ;;  %v1288_v44 = vpack.c.bf16 %v1224_v17, %v1266_v33  ;;  %v759_v42 = vadd.s32 208, %v4672_v36  ;;  %v1204_v20 = vrot.slane %v6233_v8, 7  ;;  %v1268_v43 = vsel %vm1171_vm9, %v1223_v9, 0.0  ;;  %v6243_v9 = vld [vmem:[#allocation23_spill] sm:$0xff] }
 0x140   : > { %4329 = vmatmul.mubr.msk.bf16.gmra.mxu0 %vm1630_vm3, %v6231_v24  ;;  %vm1173_vm10 = vcmp.ne.s32.totalorder %v937_v11, 0  ;;  %v761_v5 = vadd.s32 224, %v4672_v36  ;;  %v1220_v12 = vsel %vm1213_vm6, %v1205_v55, %v1206_v50  ;;  %v1207_v13 = vrot.slane %v5078_v51, 7  ;;  %v6241_v11 = vld [vmem:[#allocation21_spill] sm:$0xff]  ;;  %v4503_v8 = vld [vmem:[%s6067_s3 + $0x48] sm:$0xff]  }
 0x141   : > { %4332 = vmatprep.mubr.msk.bf16.mxu0 %vm1630_vm3, %v6232_v47  ;;  %v1221_v63 = vsel %vm1213_vm6, %v1204_v20, %v1205_v55  ;;  %v951_v1 = vand.u32 15, %v759_v42  ;;  %v1222_v14 = vsel %vm1213_vm6, %v1203_v28, %v1204_v20  ;;  %v1209_v10 = vrot.slane %v5135_v27, 7  ;;  %v6240_v55 = vld [vmem:[#allocation19_spill] sm:$0xff]  ;;  %v6246_v20 = vld [vmem:[#allocation22_spill] sm:$0xff] }
 0x142   : > { %v1289_v46 = vpack.c.bf16 %v1222_v14, %v1268_v43  ;;  %v1270_v0 = vsel %vm1173_vm10, %v1221_v63, 0.0  ;;  %v965_v18 = vand.u32 15, %v761_v5  ;;  %v1210_v49 = vrot.slane %v5145_v21, 7  ;;  %v6245_v42 = vld [vmem:[#allocation15_spill] sm:$0xff]  ;;  %v6247_v43 = vld [vmem:[#allocation24_spill] sm:$0xff]  ;;  %v4507_v63 = vld [vmem:[%s6071_s7] sm:$0xff]  }
 0x143   : > { %v1290_v57 = vpack.c.bf16 %v1220_v12, %v1270_v0  ;;  %vm1175_vm11 = vcmp.ne.s32.totalorder %v951_v1, 0  ;;  %v1219_v51 = vsel %vm1213_vm6, %v1206_v50, %v1207_v13  ;;  %v763_v58 = vadd.s32 240, %v4672_v36  ;;  %v6242_v50 = vld [vmem:[#allocation9_spill] sm:$0xff]  ;;  %v4502_v36 = vld [vmem:[%s6067_s3 + $0x50] sm:$0xff]   ;;  %v4509_v12 = vld [vmem:[%s4603_s14] sm:$0xff]  }
 0x144   : > { %v1208_v48 = vrot.slane %v6236_v54, 7  ;;  %v1272_v27 = vsel %vm1175_vm11, %v1219_v51, 0.0  ;;  %vm1177_vm12 = vcmp.ne.s32.totalorder %v965_v18, 0  ;;  %v1216_v21 = vsel %vm1213_vm6, %v1209_v10, %v1210_v49  ;;  %v4508_v14 = vld [vmem:[%s6069_s5] sm:$0xff]   ;;  %v4512_v54 = vld [vmem:[%s4603_s14 + $0x18] sm:$0xff]  }
 0x145   : > { %v979_v29 = vand.u32 15, %v763_v58  ;;  %v1211_v6 = vrot.slane %v5163_v31, 7  ;;  %v6239_v31 = vrot.slane %v5137_v23, 7  ;;  %v6244_v23 = vld [vmem:[#allocation3_spill] sm:$0xff] }
 0x146   : > { %4219 = vmatmul.mubr.msk.bf16.gmra.mxu1 %vm1630_vm3, %v1287_v22  ;;  %v1217_v32 = vsel %vm1213_vm6, %v1208_v48, %v1209_v10  ;;  %v1218_v60 = vsel %vm1213_vm6, %v1207_v13, %v1208_v48 }
 0x147   : > { %4222 = vmatprep.mubr.msk.bf16.mxu1 %vm1630_vm3, %v1288_v44  ;;  %v1291_v53 = vpack.c.bf16 %v1218_v60, %v1272_v27  ;;  %v1274_v17 = vsel %vm1177_vm12, %v1217_v32, 0.0  ;;  %vm1179_vm13 = vcmp.ne.s32.totalorder %v979_v29, 0  ;;  %v1215_v28 = vsel %vm1213_vm6, %v1210_v49, %v1211_v6  ;;  %v4513_v27 = vld [vmem:[%s4603_s14 + $0x20] sm:$0xff]  }
 0x148   : > { %4333 = vmatmul.mubr.msk.bf16.gmra.mxu0 %vm1630_vm3, %v6234_v15  ;;  %v1292_v25 = vpack.c.bf16 %v1216_v21, %v1274_v17  ;;  %v1276_v22 = vsel %vm1179_vm13, %v1215_v28, 0.0  ;;  %v1214_v33 = vsel %vm1213_vm6, %v1211_v6, %v6239_v31  ;;  %v4514_v17 = vld [vmem:[%s4603_s14 + $0x28] sm:$0xff]  }
 0x149   : > { %4336 = vmatprep.mubr.msk.bf16.mxu0 %vm1630_vm3, %v6235_v7  ;;  %v1293_v44 = vpack.c.bf16 %v1214_v33, %v1276_v22 }
 0x14e   : > { %4223 = vmatmul.mubr.msk.bf16.gmra.mxu1 %vm1630_vm3, %v1289_v46  ;;  %v4510_v46 = vld [vmem:[%s4603_s14 + $0x8] sm:$0xff]  }
 0x14f   : > { %4226 = vmatprep.mubr.msk.bf16.mxu1 %vm1630_vm3, %v1290_v57 }
 0x150   : > { %4337 = vmatmul.mubr.msk.bf16.gmra.mxu0 %vm1630_vm3, %v6237_v37 }
 0x151   : > { %4340 = vmatprep.mubr.msk.bf16.mxu0 %vm1630_vm3, %v6238_v19 }
 0x156   : > { %4227 = vmatmul.mubr.msk.bf16.gmra.mxu1 %vm1630_vm3, %v1291_v53 }
 0x157   : > { %4230 = vmatprep.mubr.msk.bf16.mxu1 %vm1630_vm3, %v1292_v25  ;;  %v4515_v25 = vld [vmem:[%s4603_s14 + $0x30] sm:$0xff]  }
 0x158   : > { %4341 = vmatmul.mubr.msk.bf16.gmra.mxu0 %vm1630_vm3, %v6240_v55 }
 0x159   : > { %4344 = vmatprep.mubr.msk.bf16.mxu0 %vm1630_vm3, %v6241_v11 }
 0x15e   : > { %4231 = vmatmul.mubr.msk.bf16.gmra.mxu1 %vm1630_vm3, %v1293_v44 }
 0x15f   : > { %4278 = vmatprep.mubr.msk.bf16.mxu1 %vm1630_vm3, %v6242_v50 }
 0x160   : > { %4345 = vmatmul.mubr.msk.bf16.gmra.mxu0 %vm1630_vm3, %v6243_v9 }
 0x166   : > { %4279 = vmatmul.mubr.msk.bf16.vlgmr.msra.gmra.mxu1 %vm1630_vm3, %v6244_v23  ;;  %v4517_v23 = vld [vmem:[%s4603_s14 + $0x40] sm:$0xff]  }
 0x167   : > { %4349 = vmatpush3.bf16.msra.mxu1 %v5356_v62  ;;  %4282 = vmatprep.mubr.msk.bf16.mxu1 %vm1630_vm3, %v6245_v42 }
 0x168   : > { %4350 = vmatprep.subr.bf16.mxu1 %v4502_v36 }
 0x16b   : > { %4351 = vmatpush3.bf16.msra.mxu1 %v4502_v36 }
 0x16c   : > { %4352 = vmatprep.subr.bf16.mxu1 %v4503_v8 }
 0x16e   : > { %4283 = vmatmul.mubr.msk.bf16.gmra.mxu1 %vm1630_vm3, %v6246_v20 }
 0x16f   : > { %4286 = vmatprep.mubr.msk.bf16.mxu1 %vm1630_vm3, %v6247_v43  ;;  %4353 = vmatpush3.bf16.msra.mxu1 %v4503_v8 }
 0x176   : > { %4287 = vmatmul.mubr.msk.bf16.gmra.mxu1 %vm1630_vm3, %v5244_v34 }
 0x177   : > { %4290 = vmatprep.mubr.msk.bf16.mxu1 %vm1630_vm3, %v5282_v2 }
 0x17e   : > { %4291 = vmatmul.mubr.msk.bf16.gmra.mxu1 %vm1630_vm3, %v5296_v39 }
 0x17f   : > { %4294 = vmatprep.mubr.msk.bf16.mxu1 %vm1630_vm3, %v5298_v30 }
 0x186   : > { %4295 = vmatmul.mubr.msk.bf16.gmra.mxu1 %vm1630_vm3, %v5321_v59 }
 0x187   : > { %4298 = vmatprep.mubr.msk.bf16.mxu1 %vm1630_vm3, %v5331_v38 }
 0x18e   : > { %4299 = vmatmul.mubr.msk.bf16.gmra.mxu1 %vm1630_vm3, %v5341_v45  ;;  %v4505_v45 = vld [vmem:[%s6071_s7 + $0x8] ss:$0 sps:$4 sm:$0xff]  }
 0x18f   : > { %4302 = vmatprep.mubr.msk.bf16.mxu1 %vm1630_vm3, %v5358_v4  ;;  %4461 = vmatprep.subr.msk.bf16.mxu1 %vm487_vm0, %v4505_v45  ;;  %v3237_v62 = vsel %vm487_vm0, %v4505_v45, 0 }
 0x196   : > { %4303 = vmatmul.mubr.msk.bf16.gmra.mxu1 %vm1630_vm3, %v5368_v56 }
 0x197   : > { %4306 = vmatprep.mubr.msk.bf16.mxu1 %vm1630_vm3, %v5387_v41 }
 0x19e   : > { %4307 = vmatmul.mubr.msk.bf16.gmra.mxu1 %vm1630_vm3, %v5394_v3 }
 0x19f   : > { %4354 = vmatprep.mubr.msk.bf16.mxu1 %vm1630_vm3, %v4699_v61  ;;  %v4504_v61 = vld [vmem:[%s6069_s5 + $0x10] sm:$0xff]  }
 0x1a0   : > { %4386 = vmatprep.subr.bf16.mxu0 %v4504_v61 }
 0x1a1   : > { %4387 = vmatpush3.bf16.msra.mxu0 %v4504_v61 }
 0x1a4   : > { %v4242_v34 = vpop.f32.mrf.mxu0 }
 0x1a6   : > { %4355 = vmatmul.mubr.msk.bf16.vlgmr.msra.gmra.mxu1 %vm1630_vm3, %v6227_v26  ;;  %v1940_v2 = vpop.f32.mrf.mxu0 }
 0x1a7   : > { %4358 = vmatprep.mubr.msk.bf16.mxu1 %vm1630_vm3, %v6228_v40  ;;  %4425 = vmatpush3.bf16.msra.mxu1 %v3237_v62  ;;  %v4506_v40 = vld [vmem:[%s6069_s5 + $0x8] sm:$0xff]   ;;  %v4519_v62 = vld [vmem:[%s4603_s14 + $0x50] sm:$0xff]  }
 0x1a8   : > { %v5563_v39 = vpop.f32.mrf.mxu0  ;;  %4388 = vmatprep.subr.bf16.mxu0 %v4506_v40  ;;  %4426 = vmatprep.subr.bf16.mxu1 %v4507_v63 }
 0x1a9   : > { %4389 = vmatpush3.bf16.msra.mxu0 %v4506_v40 }
 0x1aa   : > { %v5565_v30 = vpop.f32.mrf.mxu0  ;;  %4390 = vmatprep.subr.bf16.mxu0 %v4508_v14 }
 0x1ab   : > { %4427 = vmatpush3.bf16.msra.mxu1 %v4507_v63 }
 0x1ac   : > { %v4246_v59 = vpop.f32.mrf.mxu0 }
 0x1ad   : > { %4391 = vmatpush3.bf16.msra.mxu0 %v4508_v14  ;;  %v4521_v14 = vld [vmem:[%s4603_s14 + $0x60] sm:$0xff]  }
 0x1ae   : > { %4359 = vmatmul.mubr.msk.bf16.gmra.mxu1 %vm1630_vm3, %v6229_v35  ;;  %v1956_v38 = vpop.f32.mrf.mxu0 }
 0x1af   : > { %4362 = vmatprep.mubr.msk.bf16.mxu1 %vm1630_vm3, %v6230_v52 }
 0x1b0   : > { %v5579_v4 = vpop.f32.mrf.mxu0 }
 0x1b2   : > { %v5585_v56 = vpop.f32.mrf.mxu0 }
 0x1b4   : > { %v4250_v41 = vpop.f32.mrf.mxu0 }
 0x1b6   : > { %4363 = vmatmul.mubr.msk.bf16.gmra.mxu1 %vm1630_vm3, %v6231_v24  ;;  %v1972_v3 = vpop.f32.mrf.mxu0  ;;  %v6248_v24 = vld [vmem:[#allocation25_spill] sm:$0xff] }
 0x1b7   : > { %4366 = vmatprep.mubr.msk.bf16.mxu1 %vm1630_vm3, %v6232_v47 }
 0x1b8   : > { %v4251_v26 = vpop.f32.mrf.mxu0 }
 0x1ba   : > { %v5598_v35 = vpop.f32.mrf.mxu0 }
 0x1bc   : > { %v4254_v52 = vpop.f32.mrf.mxu0 }
 0x1be   : > { %4367 = vmatmul.mubr.msk.bf16.gmra.mxu1 %vm1630_vm3, %v6234_v15  ;;  %v1988_v47 = vpop.f32.mrf.mxu0 }
 0x1bf   : > { %4370 = vmatprep.mubr.msk.bf16.mxu1 %vm1630_vm3, %v6235_v7 }
 0x1c0   : > { %v4255_v5 = vpop.f32.mrf.mxu0 }
 0x1c2   : > { %v5610_v1 = vpop.f32.mrf.mxu0 }
 0x1c4   : > { %v4258_v13 = vpop.f32.mrf.mxu0 }
 0x1c6   : > { %4371 = vmatmul.mubr.msk.bf16.gmra.mxu1 %vm1630_vm3, %v6237_v37  ;;  %v2004_v7 = vpop.f32.mrf.mxu0 }
 0x1c7   : > { %4374 = vmatprep.mubr.msk.bf16.mxu1 %vm1630_vm3, %v6238_v19 }
 0x1c8   : > { %v4259_v51 = vpop.f32.mrf.mxu0 }
 0x1ca   : > { %v5633_v21 = vpop.f32.mrf.mxu0 }
 0x1cc   : > { %v4262_v37 = vpop.f32.mrf.mxu0 }
 0x1ce   : > { %4375 = vmatmul.mubr.msk.bf16.gmra.mxu1 %vm1630_vm3, %v6240_v55  ;;  %v2020_v22 = vpop.f32.mrf.mxu0 }
 0x1cf   : > { %4378 = vmatprep.mubr.msk.bf16.mxu1 %vm1630_vm3, %v6241_v11 }
 0x1d0   : > { %v4263_v11 = vpop.f32.mrf.mxu0 }
 0x1d2   : > { %v5659_v8 = vpop.f32.mrf.mxu0 }
 0x1d3   : > { %6249 = vst [vmem:[#allocation20_spill] sm:$0xff] %v5659_v8 }
 0x1d6   : > { %4379 = vmatmul.mubr.msk.bf16.gmra.mxu1 %vm1630_vm3, %v6243_v9  ;;  %v4516_v9 = vld [vmem:[%s4603_s14 + $0x38] sm:$0xff]  }
 0x1d7   : > { %4382 = vmatprep.mubr.msk.bf16.mxu1 %vm1630_vm3, %v6248_v24 }
 0x1de   : > { %4383 = vmatmul.mubr.bf16.gmra.mxu1 %v4533_v16  ;;  %v4511_v16 = vld [vmem:[%s4603_s14 + $0x10] sm:$0xff]  }
 0x1df   : > { %4428 = vmatprep.mubr.msk.bf16.mxu1 %vm438_vm1, %v4509_v12 }
 0x1e2   : > { %v4204_v15 = vpop.f32.mrf.mxu1 }
 0x1e3   : > { %v5617_v0 = vadd.f32 %v4242_v34, %v4204_v15 }
 0x1e4   : > { %v1713_v10 = vpop.f32.mrf.mxu1 }
 0x1e5   : > { %v5621_v57 = vadd.f32 %v1940_v2, %v1713_v10 }
 0x1e6   : > { %4429 = vmatmul.mubr.msk.bf16.vlgmr.msra.gmra.mxu1 %vm438_vm1, %v4510_v46  ;;  %v5623_v18 = vpop.f32.mrf.mxu1 }
 0x1e7   : > { %4432 = vmatprep.mubr.msk.bf16.mxu1 %vm438_vm1, %v4511_v16 }
 0x1e8   : > { %v5625_v49 = vpop.f32.mrf.mxu1 }
 0x1ea   : > { %v4208_v58 = vpop.f32.mrf.mxu1 }
 0x1eb   : > { %v5629_v48 = vadd.f32 %v4246_v59, %v4208_v58  ;;  %v4266_v59 = vpop.f32.mrf.mxu0 }
 0x1ec   : > { %v1729_v32 = vpop.f32.mrf.mxu1 }
 0x1ed   : > { %v5635_v29 = vadd.f32 %v1956_v38, %v1729_v32  ;;  %v4518_v38 = vld [vmem:[%s4603_s14 + $0x48] sm:$0xff]   ;;  %v4523_v32 = vld [vmem:[%s4603_s14 + $0x70] sm:$0xff]  }
 0x1ee   : > { %4433 = vmatmul.mubr.msk.bf16.gmra.mxu1 %vm438_vm1, %v4512_v54  ;;  %v5637_v60 = vpop.f32.mrf.mxu1  ;;  %v4522_v54 = vld [vmem:[%s4603_s14 + $0x68] sm:$0xff]  }
 0x1ef   : > { %4436 = vmatprep.mubr.msk.bf16.mxu1 %vm438_vm1, %v4513_v27 }
 0x1f0   : > { %v5639_v6 = vpop.f32.mrf.mxu1 }
 0x1f6   : > { %v4212_v53 = vpop.f32.mrf.mxu1  ;;  %4437 = vmatmul.mubr.msk.bf16.gmra.mxu1 %vm438_vm1, %v4514_v17 }
 0x1f7   : > { %v5643_v19 = vadd.f32 %v4250_v41, %v4212_v53  ;;  %4440 = vmatprep.mubr.msk.bf16.mxu1 %vm438_vm1, %v4515_v25 }
 0x1f8   : > { %v1745_v28 = vpop.f32.mrf.mxu1 }
 0x1f9   : > { %v5647_v31 = vadd.f32 %v1972_v3, %v1745_v28  ;;  %v2036_v3 = vpop.f32.mrf.mxu0 }
 0x1fa   : > { %v4213_v33 = vpop.f32.mrf.mxu1 }
 0x1fb   : > { %v5649_v55 = vadd.f32 %v4251_v26, %v4213_v33 }
 0x1fc   : > { %v5651_v44 = vpop.f32.mrf.mxu1 }
 0x1fe   : > { %v4216_v50 = vpop.f32.mrf.mxu1  ;;  %4441 = vmatmul.mubr.msk.bf16.gmra.mxu1 %vm438_vm1, %v4516_v9 }
 0x1ff   : > { %v5655_v36 = vadd.f32 %v4254_v52, %v4216_v50  ;;  %4444 = vmatprep.mubr.msk.bf16.mxu1 %vm438_vm1, %v4517_v23  ;;  %v4524_v50 = vld [vmem:[%s4603_s14 + $0x78] sm:$0xff]  }
 0x200   : > { %v1761_v42 = vpop.f32.mrf.mxu1 }
 0x201   : > { %v5661_v20 = vadd.f32 %v1988_v47, %v1761_v42  ;;  %v4267_v47 = vpop.f32.mrf.mxu0 }
 0x202   : > { %v4217_v43 = vpop.f32.mrf.mxu1 }
 0x203   : > { %v5663_v34 = vadd.f32 %v4255_v5, %v4217_v43  ;;  %v4520_v5 = vld [vmem:[%s4603_s14 + $0x58] sm:$0xff]   ;;  %v5685_v15 = vpop.f32.mrf.mxu0 }
 0x204   : > { %v5665_v2 = vpop.f32.mrf.mxu1  ;;  %6250 = vst [vmem:[#allocation5_spill] sm:$0xff] %v5685_v15 }
 0x206   : > { %v4220_v61 = vpop.f32.mrf.mxu1  ;;  %4445 = vmatmul.mubr.msk.bf16.gmra.mxu1 %vm438_vm1, %v4518_v38 }
 0x207   : > { %v5669_v45 = vadd.f32 %v4258_v13, %v4220_v61  ;;  %4448 = vmatprep.mubr.msk.bf16.mxu1 %vm438_vm1, %v4519_v62 }
 0x208   : > { %v1777_v41 = vpop.f32.mrf.mxu1 }
 0x209   : > { %v5673_v26 = vadd.f32 %v2004_v7, %v1777_v41 }
 0x20a   : > { %v4221_v40 = vpop.f32.mrf.mxu1 }
 0x20b   : > { %v5675_v52 = vadd.f32 %v4259_v51, %v4221_v40  ;;  %v4270_v51 = vpop.f32.mrf.mxu0 }
 0x20c   : > { %v5677_v24 = vpop.f32.mrf.mxu1 }
 0x20d   : > { %v2052_v53 = vpop.f32.mrf.mxu0 }
 0x20e   : > { %v4224_v63 = vpop.f32.mrf.mxu1  ;;  %4449 = vmatmul.mubr.msk.bf16.gmra.mxu1 %vm438_vm1, %v4520_v5 }
 0x20f   : > { %v5681_v12 = vadd.f32 %v4262_v37, %v4224_v63  ;;  %4452 = vmatprep.mubr.msk.bf16.mxu1 %vm438_vm1, %v4521_v14  ;;  %v4271_v33 = vpop.f32.mrf.mxu0 }
 0x210   : > { %v1793_v13 = vpop.f32.mrf.mxu1 }
 0x211   : > { %v5687_v46 = vadd.f32 %v2020_v22, %v1793_v13  ;;  %v5709_v42 = vpop.f32.mrf.mxu0 }
 0x212   : > { %v4225_v16 = vpop.f32.mrf.mxu1  ;;  %6253 = vst [vmem:[#allocation4_spill] sm:$0xff] %v5709_v42 }
 0x213   : > { %v5689_v10 = vadd.f32 %v4263_v11, %v4225_v16  ;;  %v5717_v62 = vpop.f32.mrf.mxu0 }
 0x214   : > { %v5691_v7 = vpop.f32.mrf.mxu1 }
 0x215   : > { %6251 = vst [vmem:[#allocation7_spill] sm:$0xff] %v5691_v7 }
 0x216   : > { %v4228_v58 = vpop.f32.mrf.mxu1  ;;  %4453 = vmatmul.mubr.msk.bf16.gmra.mxu1 %vm438_vm1, %v4522_v54 }
 0x217   : > { %v5695_v27 = vadd.f32 %v4266_v59, %v4228_v58  ;;  %4456 = vmatprep.mubr.msk.bf16.mxu1 %vm438_vm1, %v4523_v32 }
 0x218   : > { %v1809_v37 = vpop.f32.mrf.mxu1 }
 0x219   : > { %v5699_v17 = vadd.f32 %v2036_v3, %v1809_v37 }
 0x21a   : > { %v4229_v25 = vpop.f32.mrf.mxu1 }
 0x21b   : > { %v5701_v28 = vadd.f32 %v4267_v47, %v4229_v25  ;;  %v5722_v47 = vpop.f32.mrf.mxu0 }
 0x21c   : > { %v5703_v22 = vpop.f32.mrf.mxu1 }
 0x21d   : > { %6252 = vst [vmem:[#allocation2_spill] sm:$0xff] %v5703_v22  ;;  %v5731_v13 = vpop.f32.mrf.mxu0 }
 0x21e   : > { %v4232_v11 = vpop.f32.mrf.mxu1  ;;  %4457 = vmatmul.mubr.msk.bf16.gmra.mxu1 %vm438_vm1, %v4524_v50 }
 0x21f   : > { %v5707_v9 = vadd.f32 %v4270_v51, %v4232_v11  ;;  %v5736_v54 = vpop.f32.mrf.mxu0 }
 0x220   : > { %v1825_v23 = vpop.f32.mrf.mxu1 }
 0x221   : > { %v5711_v43 = vadd.f32 %v2052_v53, %v1825_v23  ;;  %v5745_v37 = vpop.f32.mrf.mxu0 }
 0x222   : > { %v4233_v59 = vpop.f32.mrf.mxu1 }
 0x223   : > { %v5713_v61 = vadd.f32 %v4271_v33, %v4233_v59  ;;  %v5750_v11 = vpop.f32.mrf.mxu0 }
 0x224   : > { %v5715_v38 = vpop.f32.mrf.mxu1 }
 0x225   : > { %6254 = vst [vmem:[#allocation6_spill] sm:$0xff] %v5715_v38  ;;  %v5760_v59 = vpop.f32.mrf.mxu0 }
 0x226   : > { %v4280_v41 = vpop.f32.mrf.mxu1 }
 0x227   : > { %v5720_v3 = vadd.f32 %v4280_v41, %v5617_v0 }
 0x228   : > { %v2174_v40 = vpop.f32.mrf.mxu1 }
 0x229   : > { %v5725_v63 = vadd.f32 %v2174_v40, %v5621_v57 }
 0x22a   : > { %v5727_v5 = vpop.f32.mrf.mxu1 }
 0x22c   : > { %v5729_v14 = vpop.f32.mrf.mxu1 }
 0x22e   : > { %v4284_v16 = vpop.f32.mrf.mxu1 }
 0x22f   : > { %v5734_v51 = vadd.f32 %v4284_v16, %v5629_v48  ;;  %v5765_v16 = vpop.f32.mrf.mxu0 }
 0x230   : > { %v2190_v58 = vpop.f32.mrf.mxu1 }
 0x231   : > { %v5739_v0 = vadd.f32 %v2190_v58, %v5635_v29 }
 0x232   : > { %v5741_v32 = vpop.f32.mrf.mxu1 }
 0x234   : > { %v5743_v57 = vpop.f32.mrf.mxu1 }
 0x236   : > { %v4288_v53 = vpop.f32.mrf.mxu1 }
 0x237   : > { %v5748_v25 = vadd.f32 %v4288_v53, %v5643_v19 }
 0x238   : > { %v2206_v33 = vpop.f32.mrf.mxu1 }
 0x239   : > { %v5753_v48 = vadd.f32 %v2206_v33, %v5647_v31  ;;  %v5775_v33 = vpop.f32.mrf.mxu0 }
 0x23a   : > { %v4289_v50 = vpop.f32.mrf.mxu1 }
 0x23b   : > { %v5756_v29 = vadd.f32 %v4289_v50, %v5649_v55 }
 0x23c   : > { %v5758_v23 = vpop.f32.mrf.mxu1 }
 0x23e   : > { %v4292_v41 = vpop.f32.mrf.mxu1 }
 0x23f   : > { %v5763_v40 = vadd.f32 %v4292_v41, %v5655_v36  ;;  %v5780_v41 = vpop.f32.mrf.mxu0 }
 0x240   : > { %v2222_v19 = vpop.f32.mrf.mxu1 }
 0x241   : > { %v5768_v58 = vadd.f32 %v2222_v19, %v5661_v20 }
 0x242   : > { %v4293_v31 = vpop.f32.mrf.mxu1 }
 0x243   : > { %v5771_v53 = vadd.f32 %v4293_v31, %v5663_v34  ;;  %v5790_v31 = vpop.f32.mrf.mxu0 }
 0x244   : > { %v5773_v55 = vpop.f32.mrf.mxu1 }
 0x246   : > { %v4296_v50 = vpop.f32.mrf.mxu1 }
 0x247   : > { %v5778_v42 = vadd.f32 %v4296_v50, %v5669_v45  ;;  %v5795_v50 = vpop.f32.mrf.mxu0 }
 0x248   : > { %v2238_v36 = vpop.f32.mrf.mxu1 }
 0x249   : > { %v5783_v38 = vadd.f32 %v2238_v36, %v5673_v26 }
 0x24a   : > { %v4297_v20 = vpop.f32.mrf.mxu1 }
 0x24b   : > { %v5786_v19 = vadd.f32 %v4297_v20, %v5675_v52  ;;  %v5805_v20 = vpop.f32.mrf.mxu0 }
 0x24c   : > { %v5788_v34 = vpop.f32.mrf.mxu1 }
 0x24d   : > { %6255 = vst [vmem:[#allocation8_spill] sm:$0xff] %v5786_v19 }
 0x24e   : > { %v4300_v15 = vpop.f32.mrf.mxu1 }
 0x24f   : > { %v5793_v22 = vadd.f32 %v4300_v15, %v5681_v12  ;;  %v5810_v15 = vpop.f32.mrf.mxu0 }
 0x250   : > { %v2254_v45 = vpop.f32.mrf.mxu1 }
 0x251   : > { %6256 = vst [vmem:[#allocation10_spill] sm:$0xff] %v5793_v22  ;;  %v5798_v8 = vadd.f32 %v2254_v45, %v5687_v46 }
 0x252   : > { %v4301_v26 = vpop.f32.mrf.mxu1 }
 0x253   : > { %v5801_v36 = vadd.f32 %v4301_v26, %v5689_v10  ;;  %v5820_v26 = vpop.f32.mrf.mxu0 }
 0x254   : > { %v5803_v52 = vpop.f32.mrf.mxu1 }
 0x255   : > { %6257 = vst [vmem:[#allocation11_spill] sm:$0xff] %v5801_v36  ;;  %6258 = vst [vmem:[#allocation14_spill] sm:$0xff] %v5803_v52 }
 0x256   : > { %v4304_v7 = vpop.f32.mrf.mxu1 }
 0x257   : > { %v5808_v19 = vadd.f32 %v4304_v7, %v5695_v27  ;;  %v5825_v27 = vpop.f32.mrf.mxu0 }
 0x258   : > { %v2270_v12 = vpop.f32.mrf.mxu1 }
 0x259   : > { %6259 = vst [vmem:[#allocation12_spill] sm:$0xff] %v5808_v19  ;;  %v5813_v22 = vadd.f32 %v2270_v12, %v5699_v17  ;;  %v1952_v12 = vadd.f32 %v5563_v39, %v5623_v18  ;;  %v5847_v39 = vld [vmem:[%s6068_s4] ss:$0 sm:$0xff] }
 0x25a   : > { %v4305_v46 = vpop.f32.mrf.mxu1 }
 0x25b   : > { %v5816_v45 = vadd.f32 %v4305_v46, %v5701_v28 }
 0x25c   : > { %v5818_v10 = vpop.f32.mrf.mxu1 }
 0x25d   : > { %6260 = vst [vmem:[#allocation13_spill] sm:$0xff] %v5816_v45  ;;  %v1944_v45 = vadd.f32 %v5565_v30, %v5625_v49 }
 0x25e   : > { %v4308_v36 = vpop.f32.mrf.mxu1 }
 0x25f   : > { %v5823_v52 = vadd.f32 %v4308_v36, %v5707_v9  ;;  %v5839_v9 = vpop.f32.mrf.mxu0  ;;  %v2304_v36 = vadd.f32 %v5727_v5, %v1952_v12  ;;  %v2302_v18 = vadd.f32 %v5729_v14, %v1944_v45  ;;  %v1968_v14 = vadd.f32 %v5579_v4, %v5637_v60 }
 0x260   : > { %v2286_v7 = vpop.f32.mrf.mxu1  ;;  %v2571_v4 = vadd.f32 %v5750_v11, %v5739_v0 }
 0x261   : > { %v5828_v19 = vadd.f32 %v2286_v7, %v5711_v43  ;;  %v2569_v43 = vadd.f32 %v5717_v62, %v5720_v3  ;;  %v5852_v49 = vpop.f32.mrf.mxu0  ;;  %v2570_v62 = vadd.f32 %v5731_v13, %v2304_v36  ;;  %v2573_v13 = vadd.f32 %v5745_v37, %v5734_v51 }
 0x262   : > { %v4309_v17 = vpop.f32.mrf.mxu1  ;;  %v2308_v36 = vadd.f32 %v5741_v32, %v1968_v14 }
 0x263   : > { %6261 = vst [vmem:[#allocation18_spill] sm:$0xff] %v5828_v19  ;;  %v5833_v28 = vadd.f32 %v4309_v17, %v5713_v61  ;;  %v2567_v17 = vadd.f32 %v5722_v47, %v5725_v63  ;;  %v1960_v47 = vadd.f32 %v5585_v56, %v5639_v6  ;;  %v5862_v45 = vpop.f32.mrf.mxu0 }
 0x264   : > { %v5835_v46 = vpop.f32.mrf.mxu1 }
 0x265   : > { %6262 = vst [vmem:[#allocation16_spill] sm:$0xff] %v5833_v28  ;;  %6263 = vst [vmem:[#allocation17_spill] sm:$0xff] %v5835_v46  ;;  %v2568_v46 = vadd.f32 %v5736_v54, %v2302_v18  ;;  %v2306_v54 = vadd.f32 %v5743_v57, %v1960_v47  ;;  %v2574_v57 = vadd.f32 %v5760_v59, %v2308_v36 }
 0x266   : > { %v4356_v7 = vpop.f32.mrf.mxu1  ;;  %v1976_v59 = vadd.f32 %v5598_v35, %v5651_v44 }
 0x267   : > { %v2835_v61 = vadd.f32 %v4356_v7, %v2569_v43 }
 0x268   : > { %v2706_v30 = vpop.f32.mrf.mxu1 }
 0x269   : > { %v2874_v5 = vadd.f32 %v5847_v39, %v2835_v61  ;;  %v2833_v12 = vadd.f32 %v2706_v30, %v2567_v17 }
 0x26a   : > { %v4357_v3 = vpop.f32.mrf.mxu1 }
 0x26b   : > { %v2872_v28 = vadd.f32 %v5847_v39, %v2833_v12  ;;  %v2836_v19 = vadd.f32 %v4357_v3, %v2570_v62  ;;  %v2906_v43 = vmax.f32 %v2874_v5, 0.0  ;;  %v5872_v5 = vpop.f32.mrf.mxu0  ;;  %v2572_v62 = vadd.f32 %v5765_v16, %v2306_v54 }
 0x26c   : > { %v2709_v63 = vpop.f32.mrf.mxu1 }
 0x26d   : > { %v2875_v7 = vadd.f32 %v5847_v39, %v2836_v19  ;;  %v2834_v61 = vadd.f32 %v2709_v63, %v2568_v46  ;;  %v2904_v60 = vmax.f32 %v2872_v28, 0.0  ;;  %v2938_v19 = vmin.f32 %v2906_v43, 6.0  ;;  %v5878_v63 = vpop.f32.mrf.mxu0 }
 0x26e   : > { %v4360_v18 = vpop.f32.mrf.mxu1 }
 0x26f   : > { %v2907_v56 = vmax.f32 %v2875_v7, 0.0  ;;  %v2873_v6 = vadd.f32 %v5847_v39, %v2834_v61  ;;  %v2839_v17 = vadd.f32 %v4360_v18, %v2573_v13  ;;  %v2936_v0 = vmin.f32 %v2904_v60, 6.0  ;;  %v5891_v35 = vpop.f32.mrf.mxu0 }
 0x270   : > { %v2722_v30 = vpop.f32.mrf.mxu1  ;;  %v2577_v61 = vadd.f32 %v5775_v33, %v5748_v25  ;;  %v2575_v60 = vadd.f32 %v5780_v41, %v5753_v48 }
 0x271   : > { %v2939_v46 = vmin.f32 %v2907_v56, 6.0  ;;  %v2905_v12 = vmax.f32 %v2873_v6, 0.0  ;;  %v2837_v51 = vadd.f32 %v2722_v30, %v2571_v4  ;;  %v2878_v32 = vadd.f32 %v5847_v39, %v2839_v17 }
 0x272   : > { %v4361_v37 = vpop.f32.mrf.mxu1  ;;  %v2310_v56 = vadd.f32 %v5758_v23, %v1976_v59  ;;  %v2578_v30 = vadd.f32 %v5790_v31, %v5756_v29  ;;  %v1992_v23 = vadd.f32 %v5610_v1, %v5665_v2  ;;  %v2581_v31 = vadd.f32 %v5805_v20, %v5763_v40 }
 0x273   : > { %v2969_v11 = vpack.c.bf16 %v2939_v46, %v2938_v19  ;;  %v2937_v28 = vmin.f32 %v2905_v12, 6.0  ;;  %v2876_v3 = vadd.f32 %v5847_v39, %v2837_v51  ;;  %v2840_v14 = vadd.f32 %v4361_v37, %v2574_v57 }
 0x274   : > { %v2725_v47 = vpop.f32.mrf.mxu1  ;;  %v2910_v13 = vmax.f32 %v2878_v32, 0.0  ;;  %v2576_v37 = vadd.f32 %v5795_v50, %v2310_v56  ;;  %v2579_v50 = vadd.f32 %v5810_v15, %v5768_v58  ;;  %v2582_v40 = vadd.f32 %v5820_v26, %v5771_v53 }
 0x275   : > { %v2968_v43 = vpack.c.bf16 %v2937_v28, %v2936_v0  ;;  %v2838_v7 = vadd.f32 %v2725_v47, %v2572_v62  ;;  %v2879_v16 = vadd.f32 %v5847_v39, %v2840_v14  ;;  %v2908_v54 = vmax.f32 %v2876_v3, 0.0  ;;  %v5900_v0 = vpop.f32.mrf.mxu0 }
 0x276   : > { %v4364_v36 = vpop.f32.mrf.mxu1  ;;  %v2942_v19 = vmin.f32 %v2910_v13, 6.0  ;;  %v2314_v47 = vadd.f32 %v5773_v55, %v1992_v23 }
 0x277   : > { %v2877_v18 = vadd.f32 %v5847_v39, %v2838_v7  ;;  %v2843_v4 = vadd.f32 %v4364_v36, %v2577_v61  ;;  %4392 = vmatprep.mubr.msk.bf16.mxu0 %vm1630_vm3, %v2968_v43  ;;  %v2911_v6 = vmax.f32 %v2879_v16, 0.0  ;;  %v2940_v51 = vmin.f32 %v2908_v54, 6.0  ;;  %v5913_v20 = vpop.f32.mrf.mxu0 }
 0x278   : > { %v2738_v25 = vpop.f32.mrf.mxu1  ;;  %4393 = vmatmul.mubr.msk.bf16.vlgmr.msra.gmra.mxu0 %vm1630_vm3, %v2969_v11 }
 0x279   : > { %v2909_v44 = vmax.f32 %v2877_v18, 0.0  ;;  %v2882_v33 = vadd.f32 %v5847_v39, %v2843_v4  ;;  %v2841_v17 = vadd.f32 %v2738_v25, %v2575_v60  ;;  %v2943_v46 = vmin.f32 %v2911_v6, 6.0  ;;  %v5920_v6 = vpop.f32.mrf.mxu0 }
 0x27a   : > { %v4365_v12 = vpop.f32.mrf.mxu1  ;;  %v2580_v4 = vadd.f32 %v5825_v27, %v2314_v47  ;;  %v2008_v60 = vadd.f32 %v5633_v21, %v5677_v24  ;;  %v2583_v27 = vadd.f32 %v5852_v49, %v5783_v38 }
 0x27b   : > { %v2941_v48 = vmin.f32 %v2909_v44, 6.0  ;;  %v2844_v41 = vadd.f32 %v4365_v12, %v2578_v30  ;;  %v2971_v32 = vpack.c.bf16 %v2943_v46, %v2942_v19  ;;  %v2880_v57 = vadd.f32 %v5847_v39, %v2841_v17 }
 0x27c   : > { %v2741_v62 = vpop.f32.mrf.mxu1  ;;  %v2914_v28 = vmax.f32 %v2882_v33, 0.0  ;;  %v2585_v17 = vadd.f32 %v5839_v9, %v5778_v42  ;;  %v2318_v30 = vadd.f32 %v5788_v34, %v2008_v60  ;;  %v6264_v9 = vld [vmem:[#allocation8_spill] sm:$0xff] }
 0x27d   : > { %v2970_v11 = vpack.c.bf16 %v2941_v48, %v2940_v51  ;;  %v2883_v29 = vadd.f32 %v5847_v39, %v2844_v41  ;;  %v2842_v3 = vadd.f32 %v2741_v62, %v2576_v37  ;;  %v2912_v43 = vmax.f32 %v2880_v57, 0.0  ;;  %v2536_v41 = vpop.f32.mrf.mxu0 }
 0x27e   : > { %v4368_v14 = vpop.f32.mrf.mxu1  ;;  %v2946_v59 = vmin.f32 %v2914_v28, 6.0  ;;  %v2586_v38 = vadd.f32 %v5862_v45, %v6264_v9  ;;  %v2584_v37 = vadd.f32 %v5872_v5, %v2318_v30  ;;  %v6271_v30 = vld [vmem:[#allocation5_spill] sm:$0xff] }
 0x27f   : > { %v2915_v1 = vmax.f32 %v2883_v29, 0.0  ;;  %v2847_v2 = vadd.f32 %v4368_v14, %v2581_v31  ;;  %4396 = vmatprep.mubr.msk.bf16.mxu0 %vm1630_vm3, %v2970_v11  ;;  %v2881_v7 = vadd.f32 %v5847_v39, %v2842_v3  ;;  %v2944_v56 = vmin.f32 %v2912_v43, 6.0  ;;  %v4343_v14 = vpop.f32.mrf.mxu0  ;;  %v6266_v43 = vld [vmem:[#allocation7_spill] sm:$0xff] }
 0x280   : > { %v2754_v61 = vpop.f32.mrf.mxu1  ;;  %4397 = vmatmul.mubr.msk.bf16.gmra.mxu0 %vm1630_vm3, %v2971_v32 }
 0x281   : > { %v2947_v55 = vmin.f32 %v2915_v1, 6.0  ;;  %v2886_v13 = vadd.f32 %v5847_v39, %v2847_v2  ;;  %v2845_v16 = vadd.f32 %v2754_v61, %v2579_v50  ;;  %v2913_v36 = vmax.f32 %v2881_v7, 0.0  ;;  %v6265_v2 = vld [vmem:[#allocation10_spill] sm:$0xff]  ;;  %v6267_v7 = vld [vmem:[#allocation20_spill] sm:$0xff] }
 0x282   : > { %v4369_v54 = vpop.f32.mrf.mxu1  ;;  %v2589_v50 = vadd.f32 %v5878_v63, %v6265_v2  ;;  %v2024_v61 = vadd.f32 %v6267_v7, %v6266_v43  ;;  %v6274_v43 = vld [vmem:[#allocation6_spill] sm:$0xff]  ;;  %v6275_v7 = vld [vmem:[#allocation4_spill] sm:$0xff] }
 0x283   : > { %v2973_v18 = vpack.c.bf16 %v2947_v55, %v2946_v59  ;;  %v2884_v58 = vadd.f32 %v5847_v39, %v2845_v16  ;;  %v2848_v15 = vadd.f32 %v4369_v54, %v2582_v40  ;;  %v2945_v53 = vmin.f32 %v2913_v36, 6.0  ;;  %v6268_v36 = vld [vmem:[#allocation14_spill] sm:$0xff] }
 0x284   : > { %v2757_v26 = vpop.f32.mrf.mxu1  ;;  %v2918_v25 = vmax.f32 %v2886_v13, 0.0  ;;  %v2587_v16 = vadd.f32 %v5891_v35, %v5798_v8  ;;  %v2322_v54 = vadd.f32 %v6268_v36, %v2024_v61  ;;  %v6270_v35 = vld [vmem:[#allocation2_spill] sm:$0xff]  ;;  %v2056_v61 = vadd.f32 %v6275_v7, %v6274_v43  ;;  %v6276_v36 = vld [vmem:[#allocation17_spill] sm:$0xff] }
 0x285   : > { %v2887_v44 = vadd.f32 %v5847_v39, %v2848_v15  ;;  %v2846_v33 = vadd.f32 %v2757_v26, %v2580_v4  ;;  %v2972_v19 = vpack.c.bf16 %v2945_v53, %v2944_v56  ;;  %v2916_v21 = vmax.f32 %v2884_v58, 0.0  ;;  %v2539_v58 = vpop.f32.mrf.mxu0  ;;  %v6269_v56 = vld [vmem:[#allocation11_spill] sm:$0xff] }
 0x286   : > { %v4372_v46 = vpop.f32.mrf.mxu1  ;;  %v2950_v23 = vmin.f32 %v2918_v25, 6.0  ;;  %v2590_v53 = vadd.f32 %v5900_v0, %v6269_v56 }
 0x287   : > { %v2919_v24 = vmax.f32 %v2887_v44, 0.0  ;;  %v2885_v12 = vadd.f32 %v5847_v39, %v2846_v33  ;;  %v2851_v51 = vadd.f32 %v4372_v46, %v2585_v17  ;;  %4400 = vmatprep.mubr.msk.bf16.mxu0 %vm1630_vm3, %v2972_v19  ;;  %v2948_v62 = vmin.f32 %v2916_v21, 6.0 }
 0x288   : > { %v2770_v48 = vpop.f32.mrf.mxu1  ;;  %4401 = vmatmul.mubr.msk.bf16.gmra.mxu0 %vm1630_vm3, %v2973_v18  ;;  %v2040_v19 = vadd.f32 %v6271_v30, %v6270_v35  ;;  %v2588_v21 = vadd.f32 %v5913_v20, %v2322_v54  ;;  %v2330_v54 = vadd.f32 %v6276_v36, %v2056_v61  ;;  %v6278_v35 = vld [vmem:[#allocation16_spill] sm:$0xff] }
 0x289   : > { %v2951_v32 = vmin.f32 %v2919_v24, 6.0  ;;  %v2917_v57 = vmax.f32 %v2885_v12, 0.0  ;;  %v2849_v42 = vadd.f32 %v2770_v48, %v2583_v27  ;;  %v2890_v34 = vadd.f32 %v5847_v39, %v2851_v51  ;;  %v4346_v12 = vpop.f32.mrf.mxu0 }
 0x28a   : > { %v4373_v49 = vpop.f32.mrf.mxu1 }
 0x28b   : > { %v2975_v11 = vpack.c.bf16 %v2951_v32, %v2950_v23  ;;  %v2949_v28 = vmin.f32 %v2917_v57, 6.0  ;;  %v2888_v29 = vadd.f32 %v5847_v39, %v2849_v42  ;;  %v2852_v31 = vadd.f32 %v4373_v49, %v2586_v38  ;;  %v6272_v23 = vld [vmem:[#allocation12_spill] sm:$0xff] }
 0x28c   : > { %v2773_v3 = vpop.f32.mrf.mxu1  ;;  %v2922_v45 = vmax.f32 %v2890_v34, 0.0  ;;  %v2593_v32 = vadd.f32 %v5920_v6, %v6272_v23  ;;  %v2326_v34 = vadd.f32 %v5818_v10, %v2040_v19  ;;  %v2591_v49 = vadd.f32 %v2536_v41, %v5813_v22 }
 0x28d   : > { %v2974_v47 = vpack.c.bf16 %v2949_v28, %v2948_v62  ;;  %v2850_v1 = vadd.f32 %v2773_v3, %v2584_v37  ;;  %v2891_v40 = vadd.f32 %v5847_v39, %v2852_v31  ;;  %v2920_v59 = vmax.f32 %v2888_v29, 0.0  ;;  %v2552_v29 = vpop.f32.mrf.mxu0 }
 0x28e   : > { %v4376_v5 = vpop.f32.mrf.mxu1  ;;  %v2954_v26 = vmin.f32 %v2922_v45, 6.0  ;;  %v2592_v41 = vadd.f32 %v2539_v58, %v2326_v34 }
 0x28f   : > { %v2889_v55 = vadd.f32 %v5847_v39, %v2850_v1  ;;  %v2855_v13 = vadd.f32 %v4376_v5, %v2589_v50  ;;  %4404 = vmatprep.mubr.msk.bf16.mxu0 %vm1630_vm3, %v2974_v47  ;;  %v2923_v18 = vmax.f32 %v2891_v40, 0.0  ;;  %v2952_v33 = vmin.f32 %v2920_v59, 6.0  ;;  %v4347_v5 = vpop.f32.mrf.mxu0 }
 0x290   : > { %v2786_v63 = vpop.f32.mrf.mxu1  ;;  %4405 = vmatmul.mubr.msk.bf16.gmra.mxu0 %vm1630_vm3, %v2975_v11  ;;  %v6273_v11 = vld [vmem:[#allocation13_spill] sm:$0xff]  ;;  %v2598_v30 = vadd.f32 %v4347_v5, %v6278_v35 }
 0x291   : > { %v2921_v15 = vmax.f32 %v2889_v55, 0.0  ;;  %v2894_v4 = vadd.f32 %v5847_v39, %v2855_v13  ;;  %v2853_v60 = vadd.f32 %v2786_v63, %v2587_v16  ;;  %v2955_v25 = vmin.f32 %v2923_v18, 6.0 }
 0x292   : > { %v4377_v44 = vpop.f32.mrf.mxu1  ;;  %v2594_v28 = vadd.f32 %v4343_v14, %v6273_v11  ;;  %v2597_v16 = vadd.f32 %v4346_v12, %v5823_v52 }
 0x293   : > { %v2953_v17 = vmin.f32 %v2921_v15, 6.0  ;;  %v2856_v8 = vadd.f32 %v4377_v44, %v2590_v53  ;;  %v2977_v46 = vpack.c.bf16 %v2955_v25, %v2954_v26  ;;  %v2892_v27 = vadd.f32 %v5847_v39, %v2853_v60  ;;  %v6277_v15 = vld [vmem:[#allocation18_spill] sm:$0xff]  ;;  %v2555_v25 = vpop.f32.mrf.mxu0 }
 0x294   : > { %v2789_v24 = vpop.f32.mrf.mxu1  ;;  %v2926_v48 = vmax.f32 %v2894_v4, 0.0  ;;  %v2595_v4 = vadd.f32 %v2552_v29, %v6277_v15 }
 0x295   : > { %v2976_v51 = vpack.c.bf16 %v2953_v17, %v2952_v33  ;;  %v2895_v0 = vadd.f32 %v5847_v39, %v2856_v8  ;;  %v2854_v57 = vadd.f32 %v2789_v24, %v2588_v21  ;;  %v2924_v20 = vmax.f32 %v2892_v27, 0.0 }
 0x296   : > { %v4380_v42 = vpop.f32.mrf.mxu1  ;;  %v2958_v31 = vmin.f32 %v2926_v48, 6.0 }
 0x297   : > { %v2927_v9 = vmax.f32 %v2895_v0, 0.0  ;;  %v2859_v38 = vadd.f32 %v4380_v42, %v2593_v32  ;;  %4408 = vmatprep.mubr.msk.bf16.mxu0 %vm1630_vm3, %v2976_v51  ;;  %v2893_v37 = vadd.f32 %v5847_v39, %v2854_v57  ;;  %v2956_v45 = vmin.f32 %v2924_v20, 6.0 }
 0x298   : > { %v2802_v62 = vpop.f32.mrf.mxu1  ;;  %4409 = vmatmul.mubr.msk.bf16.gmra.mxu0 %vm1630_vm3, %v2977_v46  ;;  %v2596_v46 = vadd.f32 %v2555_v25, %v2330_v54 }
 0x299   : > { %v2959_v3 = vmin.f32 %v2927_v9, 6.0  ;;  %v2898_v6 = vadd.f32 %v5847_v39, %v2859_v38  ;;  %v2857_v47 = vadd.f32 %v2802_v62, %v2591_v49  ;;  %v2925_v10 = vmax.f32 %v2893_v37, 0.0 }
 0x29a   : > { %v4381_v1 = vpop.f32.mrf.mxu1 }
 0x29b   : > { %v2979_v2 = vpack.c.bf16 %v2959_v3, %v2958_v31  ;;  %v2896_v50 = vadd.f32 %v5847_v39, %v2857_v47  ;;  %v2860_v22 = vadd.f32 %v4381_v1, %v2594_v28  ;;  %v2957_v14 = vmin.f32 %v2925_v10, 6.0 }
 0x29c   : > { %v2805_v40 = vpop.f32.mrf.mxu1  ;;  %v2930_v59 = vmax.f32 %v2898_v6, 0.0 }
 0x29d   : > { %v2899_v55 = vadd.f32 %v5847_v39, %v2860_v22  ;;  %v2858_v13 = vadd.f32 %v2805_v40, %v2592_v41  ;;  %v2978_v18 = vpack.c.bf16 %v2957_v14, %v2956_v45  ;;  %v2928_v58 = vmax.f32 %v2896_v50, 0.0  ;;  %v5992_v14 = vld [vmem:[%s6070_s6] ss:$0 sm:$0xff] }
 0x29e   : > { %v4384_v63 = vpop.f32.mrf.mxu1  ;;  %v2962_v44 = vmin.f32 %v2930_v59, 6.0 }
 0x29f   : > { %v2931_v60 = vmax.f32 %v2899_v55, 0.0  ;;  %v2897_v56 = vadd.f32 %v5847_v39, %v2858_v13  ;;  %v2863_v53 = vadd.f32 %v4384_v63, %v2597_v16  ;;  %4412 = vmatprep.mubr.msk.bf16.mxu0 %vm1630_vm3, %v2978_v18  ;;  %v2960_v27 = vmin.f32 %v2928_v58, 6.0 }
 0x2a0   : > { %v2818_v26 = vpop.f32.mrf.mxu1  ;;  %4413 = vmatmul.mubr.msk.bf16.gmra.mxu0 %vm1630_vm3, %v2979_v2 }
 0x2a1   : > { %v2963_v33 = vmin.f32 %v2931_v60, 6.0  ;;  %v2929_v17 = vmax.f32 %v2897_v56, 0.0  ;;  %v2861_v8 = vadd.f32 %v2818_v26, %v2595_v4  ;;  %v2902_v52 = vadd.f32 %v5847_v39, %v2863_v53 }
 0x2a2   : > { %v4385_v19 = vpop.f32.mrf.mxu1 }
 0x2a3   : > { %v2981_v21 = vpack.c.bf16 %v2963_v33, %v2962_v44  ;;  %v2961_v24 = vmin.f32 %v2929_v17, 6.0  ;;  %v2900_v12 = vadd.f32 %v5847_v39, %v2861_v8  ;;  %v2864_v51 = vadd.f32 %v4385_v19, %v2598_v30 }
 0x2a4   : > { %v2821_v48 = vpop.f32.mrf.mxu1  ;;  %v2934_v32 = vmax.f32 %v2902_v52, 0.0 }
 0x2a5   : > { %v2980_v0 = vpack.c.bf16 %v2961_v24, %v2960_v27  ;;  %v2862_v23 = vadd.f32 %v2821_v48, %v2596_v46  ;;  %v2903_v57 = vadd.f32 %v5847_v39, %v2864_v51  ;;  %v2932_v42 = vmax.f32 %v2900_v12, 0.0 }
 0x2a6   : > { %v2966_v49 = vmin.f32 %v2934_v32, 6.0  ;;  %v4430_v29 = vpop.f32.mrf.mxu1 }
 0x2a7   : > { %v2901_v34 = vadd.f32 %v5847_v39, %v2862_v23  ;;  %4416 = vmatprep.mubr.msk.bf16.mxu0 %vm1630_vm3, %v2980_v0  ;;  %v2935_v9 = vmax.f32 %v2903_v57, 0.0  ;;  %v2964_v37 = vmin.f32 %v2932_v42, 6.0 }
 0x2a8   : > { %4417 = vmatmul.mubr.msk.bf16.gmra.mxu0 %vm1630_vm3, %v2981_v21  ;;  %v3273_v31 = vpop.f32.mrf.mxu1 }
 0x2a9   : > { %v2933_v38 = vmax.f32 %v2901_v34, 0.0  ;;  %v2967_v20 = vmin.f32 %v2935_v9, 6.0 }
 0x2aa   : > { %v4431_v3 = vpop.f32.mrf.mxu1 }
 0x2ab   : > { %v2965_v62 = vmin.f32 %v2933_v38, 6.0  ;;  %v2983_v11 = vpack.c.bf16 %v2967_v20, %v2966_v49 }
 0x2ac   : > { %v3276_v39 = vpop.f32.mrf.mxu1 }
 0x2ad   : > { %v2982_v28 = vpack.c.bf16 %v2965_v62, %v2964_v37 }
 0x2ae   : > { %v4434_v6 = vpop.f32.mrf.mxu1 }
 0x2af   : > { %4420 = vmatprep.mubr.msk.bf16.mxu0 %vm1630_vm3, %v2982_v28 }
 0x2b0   : > { %4421 = vmatmul.mubr.msk.bf16.gmra.mxu0 %vm1630_vm3, %v2983_v11  ;;  %v3289_v47 = vpop.f32.mrf.mxu1 }
 0x2b2   : > { %v4435_v10 = vpop.f32.mrf.mxu1 }
 0x2b4   : > { %v3292_v1 = vpop.f32.mrf.mxu1 }
 0x2b6   : > { %v4438_v2 = vpop.f32.mrf.mxu1 }
 0x2b8   : > { %v3305_v50 = vpop.f32.mrf.mxu1 }
 0x2ba   : > { %v4439_v22 = vpop.f32.mrf.mxu1 }
 0x2bc   : > { %v3308_v41 = vpop.f32.mrf.mxu1 }
 0x2be   : > { %v5983_v43 = vpop.f32.mrf.mxu1 }
 0x2c0   : > { %v5985_v7 = vpop.f32.mrf.mxu1 }
 0x2c2   : > { %v5987_v61 = vpop.f32.mrf.mxu1 }
 0x2c4   : > { %v5994_v40 = vpop.f32.mrf.mxu1 }
 0x2c6   : > { %v5999_v36 = vpop.f32.mrf.mxu1 }
 0x2c8   : > { %v6009_v53 = vpop.f32.mrf.mxu1 }
 0x2ca   : > { %v4447_v52 = vpop.f32.mrf.mxu1 }
 0x2cc   : > { %v3340_v51 = vpop.f32.mrf.mxu1 }
 0x2ce   : > { %v4450_v57 = vpop.f32.mrf.mxu1 }
 0x2d0   : > { %v3353_v62 = vpop.f32.mrf.mxu1 }
 0x338   : > { %v4394_v45 = vpop.f32.mrf.mxu0 }
 0x339   : > { %v3106_v59 = vadd.f32 %v4394_v45, %v5992_v14 }
 0x33a   : > { %v3097_v5 = vpop.f32.mrf.mxu0 }
 0x33b   : > { %v3098_v13 = vadd.f32 %v5992_v14, %v3097_v5  ;;  %v3402_v18 = vadd.f32 %v4430_v29, %v3106_v59 }
 0x33c   : > { %v4395_v55 = vpop.f32.mrf.mxu0 }
 0x33d   : > { %v3109_v16 = vadd.f32 %v4395_v55, %v5992_v14  ;;  %v3400_v58 = vadd.f32 %v3273_v31, %v3098_v13 }
 0x33e   : > { %v3100_v54 = vpop.f32.mrf.mxu0 }
 0x33f   : > { %v3403_v63 = vadd.f32 %v4431_v3, %v3109_v16  ;;  %v3101_v15 = vadd.f32 %v5992_v14, %v3100_v54 }
 0x340   : > { %v4398_v4 = vpop.f32.mrf.mxu0 }
 0x341   : > { %v3923_v60 = vpack.c.bf16 %v3403_v63, %v3402_v18  ;;  %v3401_v56 = vadd.f32 %v3276_v39, %v3101_v15  ;;  %v3122_v44 = vadd.f32 %v4398_v4, %v5992_v14 }
 0x342   : > { %v3113_v26 = vpop.f32.mrf.mxu0 }
 0x343   : > { %3995 = vst [vmem:[%s6007_s26 + $0x8] sm:$0xff] %v3923_v60   ;;  %v3918_v25 = vpack.c.bf16 %v3401_v56, %v3400_v58  ;;  %v3114_v17 = vadd.f32 %v5992_v14, %v3113_v26  ;;  %v3406_v30 = vadd.f32 %v4434_v6, %v3122_v44 }
 0x344   : > { %v4399_v33 = vpop.f32.mrf.mxu0 }
 0x345   : > { %3919 = vst [vmem:[%s6007_s26] sm:$0xff] %v3918_v25   ;;  %v3125_v8 = vadd.f32 %v4399_v33, %v5992_v14  ;;  %v3404_v27 = vadd.f32 %v3289_v47, %v3114_v17  ;;  %v4451_v47 = vpop.f32.mrf.mxu1 }
 0x346   : > { %v3116_v35 = vpop.f32.mrf.mxu0 }
 0x347   : > { %v3407_v19 = vadd.f32 %v4435_v10, %v3125_v8  ;;  %v3117_v46 = vadd.f32 %v5992_v14, %v3116_v35  ;;  %v3356_v5 = vpop.f32.mrf.mxu1 }
 0x348   : > { %v4402_v12 = vpop.f32.mrf.mxu0 }
 0x349   : > { %v3933_v21 = vpack.c.bf16 %v3407_v19, %v3406_v30  ;;  %v3405_v24 = vadd.f32 %v3292_v1, %v3117_v46  ;;  %v3138_v23 = vadd.f32 %v4402_v12, %v5992_v14  ;;  %v4454_v15 = vpop.f32.mrf.mxu1 }
 0x34a   : > { %v3129_v0 = vpop.f32.mrf.mxu0 }
 0x34b   : > { %3997 = vst [vmem:[%s6007_s26 + $0x18] sm:$0xff] %v3933_v21   ;;  %v3928_v48 = vpack.c.bf16 %v3405_v24, %v3404_v27  ;;  %v3130_v42 = vadd.f32 %v5992_v14, %v3129_v0  ;;  %v3410_v38 = vadd.f32 %v4438_v2, %v3138_v23  ;;  %v3369_v56 = vpop.f32.mrf.mxu1 }
 0x34c   : > { %v4403_v32 = vpop.f32.mrf.mxu0 }
 0x34d   : > { %3996 = vst [vmem:[%s6007_s26 + $0x10] sm:$0xff] %v3928_v48   ;;  %v3141_v34 = vadd.f32 %v4403_v32, %v5992_v14  ;;  %v3408_v11 = vadd.f32 %v3305_v50, %v3130_v42  ;;  %v4455_v30 = vpop.f32.mrf.mxu1 }
 0x34e   : > { %v3132_v9 = vpop.f32.mrf.mxu0 }
 0x34f   : > { %v3411_v49 = vadd.f32 %v4439_v22, %v3141_v34  ;;  %v3133_v20 = vadd.f32 %v5992_v14, %v3132_v9  ;;  %v3372_v24 = vpop.f32.mrf.mxu1 }
 0x350   : > { %v4406_v37 = vpop.f32.mrf.mxu0 }
 0x351   : > { %v3943_v28 = vpack.c.bf16 %v3411_v49, %v3410_v38  ;;  %v3409_v29 = vadd.f32 %v3308_v41, %v3133_v20  ;;  %v3154_v39 = vadd.f32 %v4406_v37, %v5992_v14  ;;  %v4458_v34 = vpop.f32.mrf.mxu1 }
 0x352   : > { %v3145_v31 = vpop.f32.mrf.mxu0 }
 0x353   : > { %3999 = vst [vmem:[%s6007_s26 + $0x28] sm:$0xff] %v3943_v28   ;;  %v3938_v3 = vpack.c.bf16 %v3409_v29, %v3408_v11  ;;  %v3146_v10 = vadd.f32 %v5992_v14, %v3145_v31  ;;  %v3414_v22 = vadd.f32 %v5983_v43, %v3154_v39 }
 0x354   : > { %v4407_v6 = vpop.f32.mrf.mxu0 }
 0x355   : > { %3998 = vst [vmem:[%s6007_s26 + $0x20] sm:$0xff] %v3938_v3   ;;  %v3157_v1 = vadd.f32 %v4407_v6, %v5992_v14  ;;  %v3412_v59 = vadd.f32 %v5985_v7, %v3146_v10 }
 0x356   : > { %v3148_v2 = vpop.f32.mrf.mxu0 }
 0x357   : > { %v3415_v50 = vadd.f32 %v5987_v61, %v3157_v1  ;;  %v3149_v41 = vadd.f32 %v5992_v14, %v3148_v2 }
 0x358   : > { %v4410_v45 = vpop.f32.mrf.mxu0 }
 0x359   : > { %v3953_v55 = vpack.c.bf16 %v3415_v50, %v3414_v22  ;;  %v3413_v13 = vadd.f32 %v5994_v40, %v3149_v41  ;;  %v3170_v18 = vadd.f32 %v4410_v45, %v5992_v14 }
 0x35a   : > { %v3161_v16 = vpop.f32.mrf.mxu0 }
 0x35b   : > { %4001 = vst [vmem:[%s6007_s26 + $0x38] sm:$0xff] %v3953_v55   ;;  %v3948_v54 = vpack.c.bf16 %v3413_v13, %v3412_v59  ;;  %v3162_v43 = vadd.f32 %v5992_v14, %v3161_v16  ;;  %v3418_v7 = vadd.f32 %v5999_v36, %v3170_v18 }
 0x35c   : > { %v4411_v63 = vpop.f32.mrf.mxu0 }
 0x35d   : > { %4000 = vst [vmem:[%s6007_s26 + $0x30] sm:$0xff] %v3948_v54   ;;  %v3173_v61 = vadd.f32 %v4411_v63, %v5992_v14  ;;  %v3416_v26 = vadd.f32 %v6009_v53, %v3162_v43 }
 0x35e   : > { %v3164_v4 = vpop.f32.mrf.mxu0 }
 0x35f   : > { %v3419_v58 = vadd.f32 %v4447_v52, %v3173_v61  ;;  %v3165_v40 = vadd.f32 %v5992_v14, %v3164_v4 }
 0x360   : > { %v4414_v60 = vpop.f32.mrf.mxu0 }
 0x361   : > { %v3963_v25 = vpack.c.bf16 %v3419_v58, %v3418_v7  ;;  %v3417_v44 = vadd.f32 %v3340_v51, %v3165_v40  ;;  %v3186_v8 = vadd.f32 %v4414_v60, %v5992_v14 }
 0x362   : > { %v3177_v33 = vpop.f32.mrf.mxu0 }
 0x363   : > { %4003 = vst [vmem:[%s6007_s26 + $0x48] sm:$0xff] %v3963_v25   ;;  %v3958_v17 = vpack.c.bf16 %v3417_v44, %v3416_v26  ;;  %v3178_v36 = vadd.f32 %v5992_v14, %v3177_v33  ;;  %v3422_v46 = vadd.f32 %v4450_v57, %v3186_v8 }
 0x364   : > { %v4415_v35 = vpop.f32.mrf.mxu0 }
 0x365   : > { %4002 = vst [vmem:[%s6007_s26 + $0x40] sm:$0xff] %v3958_v17   ;;  %v3189_v52 = vadd.f32 %v4415_v35, %v5992_v14  ;;  %v3420_v12 = vadd.f32 %v3353_v62, %v3178_v36  ;;  %v3385_v62 = vpop.f32.mrf.mxu1 }
 0x366   : > { %v3180_v19 = vpop.f32.mrf.mxu0 }
 0x367   : > { %v3423_v27 = vadd.f32 %v4451_v47, %v3189_v52  ;;  %v3181_v53 = vadd.f32 %v5992_v14, %v3180_v19  ;;  %v4459_v47 = vpop.f32.mrf.mxu1 }
 0x368   : > { %v4418_v21 = vpop.f32.mrf.mxu0 }
 0x369   : > { %v3973_v51 = vpack.c.bf16 %v3423_v27, %v3422_v46  ;;  %v3421_v48 = vadd.f32 %v3356_v5, %v3181_v53  ;;  %v3202_v32 = vadd.f32 %v4418_v21, %v5992_v14  ;;  %v3388_v5 = vpop.f32.mrf.mxu1 }
 0x36a   : > { %v3193_v0 = vpop.f32.mrf.mxu0 }
 0x36b   : > { %4005 = vst [vmem:[%s6007_s26 + $0x58] sm:$0xff] %v3973_v51   ;;  %v3968_v23 = vpack.c.bf16 %v3421_v48, %v3420_v12  ;;  %v3194_v9 = vadd.f32 %v5992_v14, %v3193_v0  ;;  %v3426_v49 = vadd.f32 %v4454_v15, %v3202_v32 }
 0x36c   : > { %v4419_v42 = vpop.f32.mrf.mxu0 }
 0x36d   : > { %4004 = vst [vmem:[%s6007_s26 + $0x50] sm:$0xff] %v3968_v23   ;;  %v3205_v57 = vadd.f32 %v4419_v42, %v5992_v14  ;;  %v3424_v28 = vadd.f32 %v3369_v56, %v3194_v9 }
 0x36e   : > { %v3196_v38 = vpop.f32.mrf.mxu0 }
 0x36f   : > { %v3427_v20 = vadd.f32 %v4455_v30, %v3205_v57  ;;  %v3197_v37 = vadd.f32 %v5992_v14, %v3196_v38 }
 0x370   : > { %v4422_v11 = vpop.f32.mrf.mxu0 }
 0x371   : > { %v3983_v29 = vpack.c.bf16 %v3427_v20, %v3426_v49  ;;  %v3425_v31 = vadd.f32 %v3372_v24, %v3197_v37  ;;  %v3218_v6 = vadd.f32 %v4422_v11, %v5992_v14 }
 0x372   : > { %v3209_v3 = vpop.f32.mrf.mxu0 }
 0x373   : > { %4007 = vst [vmem:[%s6007_s26 + $0x68] sm:$0xff] %v3983_v29   ;;  %v3978_v39 = vpack.c.bf16 %v3425_v31, %v3424_v28  ;;  %v3210_v1 = vadd.f32 %v5992_v14, %v3209_v3  ;;  %v3430_v50 = vadd.f32 %v4458_v34, %v3218_v6 }
 0x374   : > { %v4423_v10 = vpop.f32.mrf.mxu0 }
 0x375   : > { %4006 = vst [vmem:[%s6007_s26 + $0x60] sm:$0xff] %v3978_v39   ;;  %v3221_v2 = vadd.f32 %v4423_v10, %v5992_v14  ;;  %v3428_v59 = vadd.f32 %v3385_v62, %v3210_v1 }
 0x376   : > { %v3212_v22 = vpop.f32.mrf.mxu0 }
 0x377   : > { %v3431_v41 = vadd.f32 %v4459_v47, %v3221_v2  ;;  %v3213_v45 = vadd.f32 %v5992_v14, %v3212_v22 }
 0x379   : > { %v3993_v55 = vpack.c.bf16 %v3431_v41, %v3430_v50  ;;  %v3429_v13 = vadd.f32 %v3388_v5, %v3213_v45 }
 0x37b   : > { %4009 = vst [vmem:[%s6007_s26 + $0x78] sm:$0xff] %v3993_v55   ;;  %v3988_v16 = vpack.c.bf16 %v3429_v13, %v3428_v59 }
 0x37d   : > { %4008 = vst [vmem:[%s6007_s26 + $0x70] sm:$0xff] %v3988_v16  }
 0x37e PF: > { %s18_s27 = sadd.s32 1, %s4531_s27  }
 0x37f   : > { %p15_p4 = scmp.ge.s32.totalorder %s18_s27, 4  }
 0x381   :  { %17 = sbr.rel (!%p15_p4) target bundleno = 1 (0x1), region = 86 }

</bundles_post_ra>
